<compile_context>
chip_gen: v7x
topology: tpu7x:2x2x1
jax: 0.10.0
libtpu: 0.0.40
codegen_flags: <defaults>
</compile_context>

<pallas_src>
import functools

import jax
import jax.numpy as jnp
import numpy as np
from jax.experimental import pallas as pl
from jax.experimental.pallas import tpu as pltpu

# bf16 MXU inputs (v6e/v7x native bf16 MXU; v5e has no native f32 MXU path).
# Accumulation stays f32 via preferred_element_type.
_MATMUL_DTYPE = jnp.bfloat16
_WEIGHT_DTYPE = jnp.bfloat16


# ----------------------------------------------------------------------------
# In-kernel helpers
# ----------------------------------------------------------------------------
def _layernorm(x, gamma, beta, eps=1e-5):
    mean = jnp.mean(x, axis=-1, keepdims=True)
    var = jnp.mean((x - mean) ** 2, axis=-1, keepdims=True)
    return (x - mean) * jax.lax.rsqrt(var + eps) * gamma + beta


def _dot(a, b):
    return jnp.dot(a.astype(_MATMUL_DTYPE), b.astype(_MATMUL_DTYPE),
                   preferred_element_type=jnp.float32)


def _einsum(eq, a, b):
    return jnp.einsum(eq, a.astype(_MATMUL_DTYPE), b.astype(_MATMUL_DTYPE),
                      preferred_element_type=jnp.float32)


def _softmax_lastdim(s):
    m = jnp.max(s, axis=-1, keepdims=True)
    e = jnp.exp(s - m)
    denom = jnp.sum(e, axis=-1, keepdims=True)
    return e * pl.reciprocal(denom, approx=True)   # EUP slot, VALU stays free


# ----------------------------------------------------------------------------
# Fused per-(batch-block, layer) kernel.  The output block is resident across
# the depth grid axis, so the activation never leaves VMEM between layers.
# ----------------------------------------------------------------------------
def transformer_layer_kernel(x_ref, ln1g_ref, ln1b_ref, wqkv_ref, wout_ref,
                             bout_ref, bias_ref, ln2g_ref, ln2b_ref,
                             w1_ref, b1_ref, w2_ref, b2_ref, o_ref,
                             *, batch_block, tokens, heads, dim_head,
                             approx_gelu):
    d = pl.program_id(1)

    @pl.when(d == 0)
    def _():
        # One block copy per batch-block (amortised over `depth` layers).
        o_ref[...] = x_ref[...]

    x = o_ref[...]                       # (M, D) f32 resident, M = Bb * N
    inner = heads * dim_head

    # ---------------- PreNorm + AttentionRelative + residual ----------------
    xn = _layernorm(x, ln1g_ref[0], ln1b_ref[0])
    # Single fused QKV matmul over all Bb*N rows (full MXU fill); the attention
    # scale is already folded into the Q columns of wqkv wrapper-side.
    qkv = _dot(xn, wqkv_ref[0])          # (M, 3*inner) f32

    bias = bias_ref[0].astype(jnp.float32)        # (heads, N, N)

    def split_heads(base):
        # 'm (h d) -> h m d'
        # TODO(synk): these lane-axis slices (width dim_head) are the remaining
        # relayout; pre-splitting per-head projection weights would remove them
        # but costs MXU efficiency on the QKV matmul (small-K per-head matmuls).
        return jnp.stack([qkv[:, base + h * dim_head: base + (h + 1) * dim_head]
                          for h in range(heads)], axis=0)

    q_all = split_heads(0)               # (heads, M, dh)
    k_all = split_heads(inner)
    v_all = split_heads(2 * inner)

    # Attention must stay per batch row; the Bb loop is a static unroll and the
    # per-row slices below are sublane-aligned (N % 8 == 0) -> cheap.
    o_rows = []
    for b in range(batch_block):
        r0 = b * tokens
        q = q_all[:, r0:r0 + tokens, :]
        k = k_all[:, r0:r0 + tokens, :]
        v = v_all[:, r0:r0 + tokens, :]
        s = _einsum('hnd,hmd->hnm', q, k) + bias      # one batched MXU call
        p = _softmax_lastdim(s)
        o_rows.append(_einsum('hnm,hmd->hnd', p, v))  # one batched MXU call
    o_all = o_rows[0] if batch_block == 1 else jnp.concatenate(o_rows, axis=1)

    # Head-merge fused into the output projection (no lane-axis head concat):
    #   y[m, c] = sum_h sum_k o_all[h, m, k] * wout[h, k, c]
    y = _einsum('hmk,hkc->hmc', o_all, wout_ref[0]).sum(axis=0)   # (M, D)
    x = x + y + bout_ref[0]                                       # residual

    # ---------------------- PreNorm + FeedForward + residual ----------------
    xn2 = _layernorm(x, ln2g_ref[0], ln2b_ref[0])
    hid = _dot(xn2, w1_ref[0]) + b1_ref[0]
    hid = jax.nn.gelu(hid, approximate=approx_gelu)   # tanh -> EUP; False = exact erf
    x = x + _dot(hid, w2_ref[0]) + b2_ref[0]          # residual

    o_ref[...] = x.astype(o_ref.dtype)                # stays in VMEM across layers


# ----------------------------------------------------------------------------
# pallas_call wrapper: one call for the whole stack
# ----------------------------------------------------------------------------
def transformer_fused(x2d, p, bias, *, batch_block, tokens, heads, dim_head,
                      approx_gelu):
    M_total, D = x2d.shape
    depth = p["wqkv"].shape[0]
    inner = heads * dim_head
    H = p["w1"].shape[-1]
    M = batch_block * tokens
    assert M_total % M == 0
    n_bblocks = M_total // M

    kern = functools.partial(transformer_layer_kernel, batch_block=batch_block,
                             tokens=tokens, heads=heads, dim_head=dim_head,
                             approx_gelu=approx_gelu)

    act_spec = pl.BlockSpec((M, D), lambda g, d: (g, 0))

    def wspec(*shape):
        zeros = (0,) * len(shape)
        return pl.BlockSpec((1,) + tuple(shape), lambda g, d: (d,) + zeros)

    # VMEM budget: double-buffered per-layer bf16 weights + bias, resident f32
    # activation (in + out blocks), rough intermediates, plus headroom.
    bfb, f4 = 2, 4
    w_bytes = ((D * 3 * inner + inner * D + D * H + H * D) * bfb
               + heads * tokens * tokens * bfb + (6 * D + 2 * H) * f4)
    act_bytes = 2 * M * D * f4
    inter_bytes = (M * 3 * inner + 3 * heads * M * dim_head
                   + 2 * heads * tokens * tokens + heads * M * D + M * H) * f4
    vmem_bytes = int(min(120 << 20,
                         max(32 << 20,
                             2 * w_bytes + 2 * act_bytes + inter_bytes + (8 << 20))))

    return pl.pallas_call(
        kern,
        out_shape=jax.ShapeDtypeStruct((M_total, D), x2d.dtype),
        grid=(n_bblocks, depth),
        in_specs=[
            act_spec,                        # x (f32)
            wspec(1, D), wspec(1, D),        # ln1 gamma / beta (f32)
            wspec(D, 3 * inner),             # wqkv (bf16, q-part pre-scaled)
            wspec(heads, dim_head, D),       # wout reshaped per head (bf16)
            wspec(1, D),                     # bout (f32)
            wspec(heads, tokens, tokens),    # relative position bias (bf16)
            wspec(1, D), wspec(1, D),        # ln2 gamma / beta (f32)
            wspec(D, H), wspec(1, H),        # w1 (bf16), b1 (f32)
            wspec(H, D), wspec(1, D),        # w2 (bf16), b2 (f32)
        ],
        out_specs=act_spec,
        input_output_aliases={0: 0},         # activation updated in place
        compiler_params=pltpu.CompilerParams(
            dimension_semantics=("parallel", "arbitrary"),
            vmem_limit_bytes=vmem_bytes),
    )(x2d, p["ln1_g"], p["ln1_b"], p["wqkv"], p["wout"], p["bout"], bias,
      p["ln2_g"], p["ln2_b"], p["w1"], p["b1"], p["w2"], p["b2"])


# ----------------------------------------------------------------------------
# Relative position index — exact same arithmetic as the PyTorch __init__
# (including the 2*after_patch_height-1 row multiplier).
# ----------------------------------------------------------------------------
def relative_position_index(ah, aw):
    coords_h = np.arange(ah)
    coords_w = np.arange(aw)
    coords = np.stack(np.meshgrid(coords_h, coords_w, indexing="ij"))   # (2, ah, aw)
    coords_flatten = coords.reshape(2, -1)                              # (2, ah*aw)
    rel = coords_flatten[:, :, None] - coords_flatten[:, None, :]       # (2, n, n)
    rel = rel.transpose(1, 2, 0).copy()                                 # (n, n, 2)
    rel[:, :, 0] += ah - 1
    rel[:, :, 1] += aw - 1
    rel[:, :, 0] *= 2 * ah - 1
    idx = rel.sum(-1)                                                   # (n, n)
    return jnp.asarray(idx, dtype=jnp.int32)


# ----------------------------------------------------------------------------
# Full Transformer forward (wrapper-side prep: bias gather, weight reshapes,
# scale folding, bf16 casts).  Jit this for real use.
# ----------------------------------------------------------------------------
def transformer_forward(x, params, *, heads_list, dim_head, ah, aw,
                        block_b=None, approx_gelu=True):
    heads = heads_list[0]
    # TODO(synk): fused depth-stacked kernel assumes a uniform head count per
    # layer; for per-layer head counts fall back to one call per layer.
    assert all(h == heads for h in heads_list), "fused kernel needs uniform heads"

    B, n, D = x.shape
    assert n == ah * aw
    assert n % 8 == 0, "token count must be sublane-aligned (pad wrapper-side)"
    if block_b is None:
        block_b = B
    assert B % block_b == 0

    inner = heads * dim_head
    scale = dim_head ** (-0.5)
    depth = params["wqkv"].shape[0]

    # Hoisted bias gather: one XLA gather for all layers -> (depth, heads, n, n)
    rpi = relative_position_index(ah, aw).reshape(-1)
    table = params["rel_bias_table"]                          # (depth, T, heads)
    bias = (table[:, rpi, :].reshape(depth, n, n, heads)
            .transpose(0, 3, 1, 2).astype(_WEIGHT_DTYPE))

    # Fold the attention scale into the Q projection columns (free), pre-split
    # the output projection per head, and cast the big weights to bf16.
    wqkv = params["wqkv"]
    wqkv = jnp.concatenate([wqkv[:, :, :inner] * scale, wqkv[:, :, inner:]],
                           axis=-1).astype(_WEIGHT_DTYPE)
    wout = params["wout"].reshape(depth, heads, dim_head, D).astype(_WEIGHT_DTYPE)

    p = dict(params)
    p["wqkv"] = wqkv
    p["wout"] = wout
    p["w1"] = params["w1"].astype(_WEIGHT_DTYPE)
    p["w2"] = params["w2"].astype(_WEIGHT_DTYPE)

    x2d = x.reshape(B * n, D)
    out2d = transformer_fused(x2d, p, bias, batch_block=block_b, tokens=n,
                              heads=heads, dim_head=dim_head,
                              approx_gelu=approx_gelu)
    return out2d.reshape(B, n, D)


# ----------------------------------------------------------------------------
# Parameter init (depth-stacked) and a pure-JAX f32 reference for validation
# ----------------------------------------------------------------------------
def init_params(key, *, dim, depth, heads, dim_head, mlp_dim, ah, aw):
    inner = heads * dim_head
    T = (2 * ah - 1) * (2 * aw - 1)
    keys = jax.random.split(key, 5)
    return {
        "ln1_g": jnp.ones((depth, 1, dim), jnp.float32),
        "ln1_b": jnp.zeros((depth, 1, dim), jnp.float32),
        "wqkv": 0.02 * jax.random.normal(keys[0], (depth, dim, 3 * inner), jnp.float32),
        "wout": 0.02 * jax.random.normal(keys[1], (depth, inner, dim), jnp.float32),
        "bout": jnp.zeros((depth, 1, dim), jnp.float32),
        "rel_bias_table": 0.02 * jax.random.normal(keys[2], (depth, T, heads), jnp.float32),
        "ln2_g": jnp.ones((depth, 1, dim), jnp.float32),
        "ln2_b": jnp.zeros((depth, 1, dim), jnp.float32),
        "w1": 0.02 * jax.random.normal(keys[3], (depth, dim, mlp_dim), jnp.float32),
        "b1": jnp.zeros((depth, 1, mlp_dim), jnp.float32),
        "w2": 0.02 * jax.random.normal(keys[4], (depth, mlp_dim, dim), jnp.float32),
        "b2": jnp.zeros((depth, 1, dim), jnp.float32),
    }


def reference_forward(x, p, *, heads, dim_head, ah, aw):
    n = ah * aw
    rpi = relative_position_index(ah, aw).reshape(-1)
    depth = p["wqkv"].shape[0]
    inner = heads * dim_head
    scale = dim_head ** (-0.5)

    def ln(t, g, b, eps=1e-5):
        m = t.mean(-1, keepdims=True)
        v = ((t - m) ** 2).mean(-1, keepdims=True)
        return (t - m) / jnp.sqrt(v + eps) * g + b

    B = x.shape[0]
    for d in range(depth):
        xn = ln(x, p["ln1_g"][d, 0], p["ln1_b"][d, 0])
        qkv = xn @ p["wqkv"][d]
        q, k, v = jnp.split(qkv, 3, axis=-1)
        sh = lambda t: t.reshape(B, n, heads, dim_head).transpose(0, 2, 1, 3)
        q, k, v = sh(q), sh(k), sh(v)
        dots = jnp.einsum('bhnd,bhmd->bhnm', q, k) * scale
        bias = p["rel_bias_table"][d][rpi].reshape(n, n, heads).transpose(2, 0, 1)
        attn = jax.nn.softmax(dots + bias[None], axis=-1)
        out = jnp.einsum('bhnm,bhmd->bhnd', attn, v)
        out = out.transpose(0, 2, 1, 3).reshape(B, n, inner)
        x = x + (out @ p["wout"][d] + p["bout"][d, 0])
        xn2 = ln(x, p["ln2_g"][d, 0], p["ln2_b"][d, 0])
        h = jax.nn.gelu(xn2 @ p["w1"][d] + p["b1"][d, 0], approximate=False)
        x = x + (h @ p["w2"][d] + p["b2"][d, 0])
    return x


if __name__ == "__main__":
    # image_size=(16,16), patch_size=(4,4) -> after_patch 4x4 -> n = 16 tokens
    B, dim, depth, dim_head, mlp_dim = 4, 32, 2, 8, 64
    heads_list = (4, 4)
    ah, aw = 4, 4
    n = ah * aw

    key = jax.random.PRNGKey(0)
    xkey, pkey = jax.random.split(key)
    x = jax.random.normal(xkey, (B, n, dim), jnp.float32)
    params = init_params(pkey, dim=dim, depth=depth, heads=heads_list[0],
                         dim_head=dim_head, mlp_dim=mlp_dim, ah=ah, aw=aw)

    # f32 / exact-gelu reference (kernel runs bf16 matmuls + tanh gelu; the
    # residual path is kept f32 so the error stays far below the tolerance).
    ref = reference_forward(x, params, heads=heads_list[0], dim_head=dim_head,
                            ah=ah, aw=aw)
    ref = jax.block_until_ready(ref)

    fwd = jax.jit(functools.partial(
        transformer_forward, heads_list=heads_list, dim_head=dim_head,
        ah=ah, aw=aw, block_b=2, approx_gelu=True))
    out = jax.block_until_ready(fwd(x, params))

    assert out.shape == (B, n, dim)
    err = float(jnp.max(jnp.abs(out - ref)))
    assert err < 1e-2, f"max abs error {err}"
    print("KERNEL_OK")
</pallas_src>

<mosaic_0001>
module attributes {stable_mosaic.version = 11 : i64} {
  func.func @transformer_layer_kernel(%arg0: i32, %arg1: i32, %arg2: memref<32x32xf32, #tpu.memory_space<vmem>>, %arg3: memref<1x1x32xf32, #tpu.memory_space<vmem>>, %arg4: memref<1x1x32xf32, #tpu.memory_space<vmem>>, %arg5: memref<1x32x96xbf16, #tpu.memory_space<vmem>>, %arg6: memref<1x4x8x32xbf16, #tpu.memory_space<vmem>>, %arg7: memref<1x1x32xf32, #tpu.memory_space<vmem>>, %arg8: memref<1x4x16x16xbf16, #tpu.memory_space<vmem>>, %arg9: memref<1x1x32xf32, #tpu.memory_space<vmem>>, %arg10: memref<1x1x32xf32, #tpu.memory_space<vmem>>, %arg11: memref<1x32x64xbf16, #tpu.memory_space<vmem>>, %arg12: memref<1x1x64xf32, #tpu.memory_space<vmem>>, %arg13: memref<1x64x32xbf16, #tpu.memory_space<vmem>>, %arg14: memref<1x1x32xf32, #tpu.memory_space<vmem>>, %arg15: memref<32x32xf32, #tpu.memory_space<vmem>>) attributes {dimension_semantics = [#tpu.dimension_semantics<parallel>, #tpu.dimension_semantics<arbitrary>], iteration_bounds = array<i64: 2, 2>, scalar_prefetch = 0 : i64, scratch_operands = 0 : i64, tpu.core_type = #tpu.core_type<tc>, window_params = [{transform_indices = @transform_0, window_bounds = array<i64: 32, 32>}, {transform_indices = @transform_1, window_bounds = array<i64: 1, 1, 32>}, {transform_indices = @transform_2, window_bounds = array<i64: 1, 1, 32>}, {transform_indices = @transform_3, window_bounds = array<i64: 1, 32, 96>}, {transform_indices = @transform_4, window_bounds = array<i64: 1, 4, 8, 32>}, {transform_indices = @transform_5, window_bounds = array<i64: 1, 1, 32>}, {transform_indices = @transform_6, window_bounds = array<i64: 1, 4, 16, 16>}, {transform_indices = @transform_7, window_bounds = array<i64: 1, 1, 32>}, {transform_indices = @transform_8, window_bounds = array<i64: 1, 1, 32>}, {transform_indices = @transform_9, window_bounds = array<i64: 1, 32, 64>}, {transform_indices = @transform_10, window_bounds = array<i64: 1, 1, 64>}, {transform_indices = @transform_11, window_bounds = array<i64: 1, 64, 32>}, {transform_indices = @transform_12, window_bounds = array<i64: 1, 1, 32>}, {transform_indices = @transform_13, window_bounds = array<i64: 32, 32>}]} {
    %c0_i32 = arith.constant 0 : i32
    %0 = arith.cmpi eq, %arg1, %c0_i32 : i32
    %1 = arith.extui %0 : i1 to i32
    %c0_i32_0 = arith.constant 0 : i32
    %2 = arith.cmpi ne, %1, %c0_i32_0 : i32
    scf.if %2 {
      %c0_68 = arith.constant 0 : index
      %c0_69 = arith.constant 0 : index
      %172 = vector.load %arg2[%c0_68, %c0_69] : memref<32x32xf32, #tpu.memory_space<vmem>>, vector<32x32xf32>
      %c0_70 = arith.constant 0 : index
      %c0_71 = arith.constant 0 : index
      %173 = vector.load %arg15[%c0_70, %c0_71] : memref<32x32xf32, #tpu.memory_space<vmem>>, vector<32x32xf32>
      tpu.vector_store %arg15[%c0_70, %c0_71], %172 {strides = array<i32>} : memref<32x32xf32, #tpu.memory_space<vmem>>, vector<32x32xf32>,
    } else {
    }
    %c0 = arith.constant 0 : index
    %c0_1 = arith.constant 0 : index
    %3 = vector.load %arg15[%c0, %c0_1] : memref<32x32xf32, #tpu.memory_space<vmem>>, vector<32x32xf32>
    %c0_2 = arith.constant 0 : index
    %c0_3 = arith.constant 0 : index
    %c0_4 = arith.constant 0 : index
    %4 = vector.load %arg3[%c0_2, %c0_3, %c0_4] : memref<1x1x32xf32, #tpu.memory_space<vmem>>, vector<1x1x32xf32>
    %5 = vector.shape_cast %4 : vector<1x1x32xf32> to vector<1x32xf32>
    %c0_5 = arith.constant 0 : index
    %c0_6 = arith.constant 0 : index
    %c0_7 = arith.constant 0 : index
    %6 = vector.load %arg4[%c0_5, %c0_6, %c0_7] : memref<1x1x32xf32, #tpu.memory_space<vmem>>, vector<1x1x32xf32>
    %7 = vector.shape_cast %6 : vector<1x1x32xf32> to vector<1x32xf32>
    %cst = arith.constant dense<0.000000e+00> : vector<32xf32>
    %8 = vector.multi_reduction <add>, %3, %cst [1] : vector<32x32xf32> to vector<32xf32>
    %9 = vector.shape_cast %8 : vector<32xf32> to vector<32x1xf32>
    %cst_8 = arith.constant 3.200000e+01 : f32
    %10 = vector.broadcast %cst_8 : f32 to vector<32x1xf32>
    %11 = arith.divf %9, %10 : vector<32x1xf32>
    %12 = vector.broadcast %11 : vector<32x1xf32> to vector<32x32xf32>
    %13 = arith.subf %3, %12 : vector<32x32xf32>
    %14 = arith.mulf %13, %13 : vector<32x32xf32>
    %cst_9 = arith.constant dense<0.000000e+00> : vector<32xf32>
    %15 = vector.multi_reduction <add>, %14, %cst_9 [1] : vector<32x32xf32> to vector<32xf32>
    %16 = vector.shape_cast %15 : vector<32xf32> to vector<32x1xf32>
    %cst_10 = arith.constant 3.200000e+01 : f32
    %17 = vector.broadcast %cst_10 : f32 to vector<32x1xf32>
    %18 = arith.divf %16, %17 : vector<32x1xf32>
    %19 = vector.broadcast %11 : vector<32x1xf32> to vector<32x32xf32>
    %20 = arith.subf %3, %19 : vector<32x32xf32>
    %cst_11 = arith.constant 9.99999974E-6 : f32
    %21 = vector.broadcast %cst_11 : f32 to vector<32x1xf32>
    %22 = arith.addf %18, %21 : vector<32x1xf32>
    %23 = math.rsqrt %22 : vector<32x1xf32>
    %24 = vector.broadcast %23 : vector<32x1xf32> to vector<32x32xf32>
    %25 = arith.mulf %20, %24 : vector<32x32xf32>
    %26 = vector.broadcast %5 : vector<1x32xf32> to vector<32x32xf32>
    %27 = arith.mulf %25, %26 : vector<32x32xf32>
    %28 = vector.broadcast %7 : vector<1x32xf32> to vector<32x32xf32>
    %29 = arith.addf %27, %28 : vector<32x32xf32>
    %c0_12 = arith.constant 0 : index
    %c0_13 = arith.constant 0 : index
    %c0_14 = arith.constant 0 : index
    %30 = vector.load %arg5[%c0_12, %c0_13, %c0_14] : memref<1x32x96xbf16, #tpu.memory_space<vmem>>, vector<1x32x96xbf16>
    %31 = vector.shape_cast %30 : vector<1x32x96xbf16> to vector<32x96xbf16>
    %32 = arith.truncf %29 : vector<32x32xf32> to vector<32x32xbf16>
    %cst_15 = arith.constant dense<0.000000e+00> : vector<32x96xf32>
    %33 = tpu.matmul %32, %31, %cst_15 {dimension_numbers = #tpu.dot_dimension_numbers<[1], [0], [0], [1], [0, 0, 1, 1], [], []>} : vector<32x32xbf16>, vector<32x96xbf16>, vector<32x96xf32> -> vector<32x96xf32>
    %c0_16 = arith.constant 0 : index
    %c0_17 = arith.constant 0 : index
    %c0_18 = arith.constant 0 : index
    %c0_19 = arith.constant 0 : index
    %34 = vector.load %arg8[%c0_16, %c0_17, %c0_18, %c0_19] : memref<1x4x16x16xbf16, #tpu.memory_space<vmem>>, vector<1x4x16x16xbf16>
    %35 = vector.shape_cast %34 : vector<1x4x16x16xbf16> to vector<4x16x16xbf16>
    %36 = arith.extf %35 : vector<4x16x16xbf16> to vector<4x16x16xf32>
    %37 = vector.extract_strided_slice %33 {offsets = [0, 0], sizes = [32, 8], strides = [1, 1]} : vector<32x96xf32> to vector<32x8xf32>
    %38 = vector.extract_strided_slice %33 {offsets = [0, 8], sizes = [32, 8], strides = [1, 1]} : vector<32x96xf32> to vector<32x8xf32>
    %39 = vector.extract_strided_slice %33 {offsets = [0, 16], sizes = [32, 8], strides = [1, 1]} : vector<32x96xf32> to vector<32x8xf32>
    %40 = vector.extract_strided_slice %33 {offsets = [0, 24], sizes = [32, 8], strides = [1, 1]} : vector<32x96xf32> to vector<32x8xf32>
    %41 = vector.shape_cast %37 : vector<32x8xf32> to vector<1x32x8xf32>
    %42 = vector.shape_cast %38 : vector<32x8xf32> to vector<1x32x8xf32>
    %43 = vector.shape_cast %39 : vector<32x8xf32> to vector<1x32x8xf32>
    %44 = vector.shape_cast %40 : vector<32x8xf32> to vector<1x32x8xf32>
    %45 = tpu.concatenate %41, %42, %43, %44 in 0 : vector<1x32x8xf32>, vector<1x32x8xf32>, vector<1x32x8xf32>, vector<1x32x8xf32> -> vector<4x32x8xf32>
    %46 = vector.extract_strided_slice %33 {offsets = [0, 32], sizes = [32, 8], strides = [1, 1]} : vector<32x96xf32> to vector<32x8xf32>
    %47 = vector.extract_strided_slice %33 {offsets = [0, 40], sizes = [32, 8], strides = [1, 1]} : vector<32x96xf32> to vector<32x8xf32>
    %48 = vector.extract_strided_slice %33 {offsets = [0, 48], sizes = [32, 8], strides = [1, 1]} : vector<32x96xf32> to vector<32x8xf32>
    %49 = vector.extract_strided_slice %33 {offsets = [0, 56], sizes = [32, 8], strides = [1, 1]} : vector<32x96xf32> to vector<32x8xf32>
    %50 = vector.shape_cast %46 : vector<32x8xf32> to vector<1x32x8xf32>
    %51 = vector.shape_cast %47 : vector<32x8xf32> to vector<1x32x8xf32>
    %52 = vector.shape_cast %48 : vector<32x8xf32> to vector<1x32x8xf32>
    %53 = vector.shape_cast %49 : vector<32x8xf32> to vector<1x32x8xf32>
    %54 = tpu.concatenate %50, %51, %52, %53 in 0 : vector<1x32x8xf32>, vector<1x32x8xf32>, vector<1x32x8xf32>, vector<1x32x8xf32> -> vector<4x32x8xf32>
    %55 = vector.extract_strided_slice %33 {offsets = [0, 64], sizes = [32, 8], strides = [1, 1]} : vector<32x96xf32> to vector<32x8xf32>
    %56 = vector.extract_strided_slice %33 {offsets = [0, 72], sizes = [32, 8], strides = [1, 1]} : vector<32x96xf32> to vector<32x8xf32>
    %57 = vector.extract_strided_slice %33 {offsets = [0, 80], sizes = [32, 8], strides = [1, 1]} : vector<32x96xf32> to vector<32x8xf32>
    %58 = vector.extract_strided_slice %33 {offsets = [0, 88], sizes = [32, 8], strides = [1, 1]} : vector<32x96xf32> to vector<32x8xf32>
    %59 = vector.shape_cast %55 : vector<32x8xf32> to vector<1x32x8xf32>
    %60 = vector.shape_cast %56 : vector<32x8xf32> to vector<1x32x8xf32>
    %61 = vector.shape_cast %57 : vector<32x8xf32> to vector<1x32x8xf32>
    %62 = vector.shape_cast %58 : vector<32x8xf32> to vector<1x32x8xf32>
    %63 = tpu.concatenate %59, %60, %61, %62 in 0 : vector<1x32x8xf32>, vector<1x32x8xf32>, vector<1x32x8xf32>, vector<1x32x8xf32> -> vector<4x32x8xf32>
    %64 = vector.extract_strided_slice %45 {offsets = [0, 0, 0], sizes = [4, 16, 8], strides = [1, 1, 1]} : vector<4x32x8xf32> to vector<4x16x8xf32>
    %65 = vector.extract_strided_slice %54 {offsets = [0, 0, 0], sizes = [4, 16, 8], strides = [1, 1, 1]} : vector<4x32x8xf32> to vector<4x16x8xf32>
    %66 = vector.extract_strided_slice %63 {offsets = [0, 0, 0], sizes = [4, 16, 8], strides = [1, 1, 1]} : vector<4x32x8xf32> to vector<4x16x8xf32>
    %67 = arith.truncf %64 : vector<4x16x8xf32> to vector<4x16x8xbf16>
    %68 = arith.truncf %65 : vector<4x16x8xf32> to vector<4x16x8xbf16>
    "tpu.trace_start"() <{level = 10 : i32, message = "hnd,hmd->hnm"}> : () -> ()
    %cst_20 = arith.constant dense<0.000000e+00> : vector<4x16x16xf32>
    %69 = tpu.matmul %67, %68, %cst_20 {dimension_numbers = #tpu.dot_dimension_numbers<[2], [2], [1], [1], [0, 0, 0, 1, 1, 1], [0], [0]>} : vector<4x16x8xbf16>, vector<4x16x8xbf16>, vector<4x16x16xf32> -> vector<4x16x16xf32>
    "tpu.trace_stop"() : () -> ()
    %70 = arith.addf %69, %36 : vector<4x16x16xf32>
    %cst_21 = arith.constant dense<0xFF800000> : vector<4x16xf32>
    %71 = vector.multi_reduction <maximumf>, %70, %cst_21 [2] : vector<4x16x16xf32> to vector<4x16xf32>
    %72 = vector.shape_cast %71 : vector<4x16xf32> to vector<4x16x1xf32>
    %73 = vector.broadcast %72 : vector<4x16x1xf32> to vector<4x16x16xf32>
    %74 = arith.subf %70, %73 : vector<4x16x16xf32>
    %75 = math.exp %74 : vector<4x16x16xf32>
    %cst_22 = arith.constant dense<0.000000e+00> : vector<4x16xf32>
    %76 = vector.multi_reduction <add>, %75, %cst_22 [2] : vector<4x16x16xf32> to vector<4x16xf32>
    %77 = vector.shape_cast %76 : vector<4x16xf32> to vector<4x16x1xf32>
    %78 = tpu.reciprocal %77 {approx = true} : vector<4x16x1xf32> -> vector<4x16x1xf32>
    %79 = vector.broadcast %78 : vector<4x16x1xf32> to vector<4x16x16xf32>
    %80 = arith.mulf %75, %79 : vector<4x16x16xf32>
    %81 = arith.truncf %80 : vector<4x16x16xf32> to vector<4x16x16xbf16>
    %82 = arith.truncf %66 : vector<4x16x8xf32> to vector<4x16x8xbf16>
    "tpu.trace_start"() <{level = 10 : i32, message = "hnm,hmd->hnd"}> : () -> ()
    %cst_23 = arith.constant dense<0.000000e+00> : vector<4x16x8xf32>
    %83 = tpu.matmul %81, %82, %cst_23 {dimension_numbers = #tpu.dot_dimension_numbers<[2], [1], [1], [2], [0, 0, 0, 1, 1, 2], [0], [0]>} : vector<4x16x16xbf16>, vector<4x16x8xbf16>, vector<4x16x8xf32> -> vector<4x16x8xf32>
    "tpu.trace_stop"() : () -> ()
    %84 = vector.extract_strided_slice %45 {offsets = [0, 16, 0], sizes = [4, 16, 8], strides = [1, 1, 1]} : vector<4x32x8xf32> to vector<4x16x8xf32>
    %85 = vector.extract_strided_slice %54 {offsets = [0, 16, 0], sizes = [4, 16, 8], strides = [1, 1, 1]} : vector<4x32x8xf32> to vector<4x16x8xf32>
    %86 = vector.extract_strided_slice %63 {offsets = [0, 16, 0], sizes = [4, 16, 8], strides = [1, 1, 1]} : vector<4x32x8xf32> to vector<4x16x8xf32>
    %87 = arith.truncf %84 : vector<4x16x8xf32> to vector<4x16x8xbf16>
    %88 = arith.truncf %85 : vector<4x16x8xf32> to vector<4x16x8xbf16>
    "tpu.trace_start"() <{level = 10 : i32, message = "hnd,hmd->hnm"}> : () -> ()
    %cst_24 = arith.constant dense<0.000000e+00> : vector<4x16x16xf32>
    %89 = tpu.matmul %87, %88, %cst_24 {dimension_numbers = #tpu.dot_dimension_numbers<[2], [2], [1], [1], [0, 0, 0, 1, 1, 1], [0], [0]>} : vector<4x16x8xbf16>, vector<4x16x8xbf16>, vector<4x16x16xf32> -> vector<4x16x16xf32>
    "tpu.trace_stop"() : () -> ()
    %90 = arith.addf %89, %36 : vector<4x16x16xf32>
    %cst_25 = arith.constant dense<0xFF800000> : vector<4x16xf32>
    %91 = vector.multi_reduction <maximumf>, %90, %cst_25 [2] : vector<4x16x16xf32> to vector<4x16xf32>
    %92 = vector.shape_cast %91 : vector<4x16xf32> to vector<4x16x1xf32>
    %93 = vector.broadcast %92 : vector<4x16x1xf32> to vector<4x16x16xf32>
    %94 = arith.subf %90, %93 : vector<4x16x16xf32>
    %95 = math.exp %94 : vector<4x16x16xf32>
    %cst_26 = arith.constant dense<0.000000e+00> : vector<4x16xf32>
    %96 = vector.multi_reduction <add>, %95, %cst_26 [2] : vector<4x16x16xf32> to vector<4x16xf32>
    %97 = vector.shape_cast %96 : vector<4x16xf32> to vector<4x16x1xf32>
    %98 = tpu.reciprocal %97 {approx = true} : vector<4x16x1xf32> -> vector<4x16x1xf32>
    %99 = vector.broadcast %98 : vector<4x16x1xf32> to vector<4x16x16xf32>
    %100 = arith.mulf %95, %99 : vector<4x16x16xf32>
    %101 = arith.truncf %100 : vector<4x16x16xf32> to vector<4x16x16xbf16>
    %102 = arith.truncf %86 : vector<4x16x8xf32> to vector<4x16x8xbf16>
    "tpu.trace_start"() <{level = 10 : i32, message = "hnm,hmd->hnd"}> : () -> ()
    %cst_27 = arith.constant dense<0.000000e+00> : vector<4x16x8xf32>
    %103 = tpu.matmul %101, %102, %cst_27 {dimension_numbers = #tpu.dot_dimension_numbers<[2], [1], [1], [2], [0, 0, 0, 1, 1, 2], [0], [0]>} : vector<4x16x16xbf16>, vector<4x16x8xbf16>, vector<4x16x8xf32> -> vector<4x16x8xf32>
    "tpu.trace_stop"() : () -> ()
    %104 = tpu.concatenate %83, %103 in 1 : vector<4x16x8xf32>, vector<4x16x8xf32> -> vector<4x32x8xf32>
    %c0_28 = arith.constant 0 : index
    %c0_29 = arith.constant 0 : index
    %c0_30 = arith.constant 0 : index
    %c0_31 = arith.constant 0 : index
    %105 = vector.load %arg6[%c0_28, %c0_29, %c0_30, %c0_31] : memref<1x4x8x32xbf16, #tpu.memory_space<vmem>>, vector<1x4x8x32xbf16>
    %106 = vector.shape_cast %105 : vector<1x4x8x32xbf16> to vector<4x8x32xbf16>
    %107 = arith.truncf %104 : vector<4x32x8xf32> to vector<4x32x8xbf16>
    "tpu.trace_start"() <{level = 10 : i32, message = "hmk,hkc->hmc"}> : () -> ()
    %cst_32 = arith.constant dense<0.000000e+00> : vector<4x32x32xf32>
    %108 = tpu.matmul %107, %106, %cst_32 {dimension_numbers = #tpu.dot_dimension_numbers<[2], [1], [1], [2], [0, 0, 0, 1, 1, 2], [0], [0]>} : vector<4x32x8xbf16>, vector<4x8x32xbf16>, vector<4x32x32xf32> -> vector<4x32x32xf32>
    "tpu.trace_stop"() : () -> ()
    %cst_33 = arith.constant dense<0.000000e+00> : vector<32x32xf32>
    %109 = vector.multi_reduction <add>, %108, %cst_33 [0] : vector<4x32x32xf32> to vector<32x32xf32>
    %110 = arith.addf %3, %109 : vector<32x32xf32>
    %c0_34 = arith.constant 0 : index
    %c0_35 = arith.constant 0 : index
    %c0_36 = arith.constant 0 : index
    %111 = vector.load %arg7[%c0_34, %c0_35, %c0_36] : memref<1x1x32xf32, #tpu.memory_space<vmem>>, vector<1x1x32xf32>
    %112 = vector.shape_cast %111 : vector<1x1x32xf32> to vector<1x32xf32>
    %113 = vector.broadcast %112 : vector<1x32xf32> to vector<32x32xf32>
    %114 = arith.addf %110, %113 : vector<32x32xf32>
    %c0_37 = arith.constant 0 : index
    %c0_38 = arith.constant 0 : index
    %c0_39 = arith.constant 0 : index
    %115 = vector.load %arg9[%c0_37, %c0_38, %c0_39] : memref<1x1x32xf32, #tpu.memory_space<vmem>>, vector<1x1x32xf32>
    %116 = vector.shape_cast %115 : vector<1x1x32xf32> to vector<1x32xf32>
    %c0_40 = arith.constant 0 : index
    %c0_41 = arith.constant 0 : index
    %c0_42 = arith.constant 0 : index
    %117 = vector.load %arg10[%c0_40, %c0_41, %c0_42] : memref<1x1x32xf32, #tpu.memory_space<vmem>>, vector<1x1x32xf32>
    %118 = vector.shape_cast %117 : vector<1x1x32xf32> to vector<1x32xf32>
    %cst_43 = arith.constant dense<0.000000e+00> : vector<32xf32>
    %119 = vector.multi_reduction <add>, %114, %cst_43 [1] : vector<32x32xf32> to vector<32xf32>
    %120 = vector.shape_cast %119 : vector<32xf32> to vector<32x1xf32>
    %cst_44 = arith.constant 3.200000e+01 : f32
    %121 = vector.broadcast %cst_44 : f32 to vector<32x1xf32>
    %122 = arith.divf %120, %121 : vector<32x1xf32>
    %123 = vector.broadcast %122 : vector<32x1xf32> to vector<32x32xf32>
    %124 = arith.subf %114, %123 : vector<32x32xf32>
    %125 = arith.mulf %124, %124 : vector<32x32xf32>
    %cst_45 = arith.constant dense<0.000000e+00> : vector<32xf32>
    %126 = vector.multi_reduction <add>, %125, %cst_45 [1] : vector<32x32xf32> to vector<32xf32>
    %127 = vector.shape_cast %126 : vector<32xf32> to vector<32x1xf32>
    %cst_46 = arith.constant 3.200000e+01 : f32
    %128 = vector.broadcast %cst_46 : f32 to vector<32x1xf32>
    %129 = arith.divf %127, %128 : vector<32x1xf32>
    %130 = vector.broadcast %122 : vector<32x1xf32> to vector<32x32xf32>
    %131 = arith.subf %114, %130 : vector<32x32xf32>
    %cst_47 = arith.constant 9.99999974E-6 : f32
    %132 = vector.broadcast %cst_47 : f32 to vector<32x1xf32>
    %133 = arith.addf %129, %132 : vector<32x1xf32>
    %134 = math.rsqrt %133 : vector<32x1xf32>
    %135 = vector.broadcast %134 : vector<32x1xf32> to vector<32x32xf32>
    %136 = arith.mulf %131, %135 : vector<32x32xf32>
    %137 = vector.broadcast %116 : vector<1x32xf32> to vector<32x32xf32>
    %138 = arith.mulf %136, %137 : vector<32x32xf32>
    %139 = vector.broadcast %118 : vector<1x32xf32> to vector<32x32xf32>
    %140 = arith.addf %138, %139 : vector<32x32xf32>
    %c0_48 = arith.constant 0 : index
    %c0_49 = arith.constant 0 : index
    %c0_50 = arith.constant 0 : index
    %141 = vector.load %arg11[%c0_48, %c0_49, %c0_50] : memref<1x32x64xbf16, #tpu.memory_space<vmem>>, vector<1x32x64xbf16>
    %142 = vector.shape_cast %141 : vector<1x32x64xbf16> to vector<32x64xbf16>
    %143 = arith.truncf %140 : vector<32x32xf32> to vector<32x32xbf16>
    %cst_51 = arith.constant dense<0.000000e+00> : vector<32x64xf32>
    %144 = tpu.matmul %143, %142, %cst_51 {dimension_numbers = #tpu.dot_dimension_numbers<[1], [0], [0], [1], [0, 0, 1, 1], [], []>} : vector<32x32xbf16>, vector<32x64xbf16>, vector<32x64xf32> -> vector<32x64xf32>
    %c0_52 = arith.constant 0 : index
    %c0_53 = arith.constant 0 : index
    %c0_54 = arith.constant 0 : index
    %145 = vector.load %arg12[%c0_52, %c0_53, %c0_54] : memref<1x1x64xf32, #tpu.memory_space<vmem>>, vector<1x1x64xf32>
    %146 = vector.shape_cast %145 : vector<1x1x64xf32> to vector<1x64xf32>
    %147 = vector.broadcast %146 : vector<1x64xf32> to vector<32x64xf32>
    %148 = arith.addf %144, %147 : vector<32x64xf32>
    %149 = arith.mulf %148, %148 : vector<32x64xf32>
    %150 = arith.mulf %148, %149 : vector<32x64xf32>
    %cst_55 = arith.constant 4.471500e-02 : f32
    %151 = vector.broadcast %cst_55 : f32 to vector<32x64xf32>
    %152 = arith.mulf %151, %150 : vector<32x64xf32>
    %153 = arith.addf %148, %152 : vector<32x64xf32>
    %cst_56 = arith.constant 0.797884583 : f32
    %154 = vector.broadcast %cst_56 : f32 to vector<32x64xf32>
    %155 = arith.mulf %154, %153 : vector<32x64xf32>
    %156 = math.tanh %155 : vector<32x64xf32>
    %cst_57 = arith.constant 1.000000e+00 : f32
    %157 = vector.broadcast %cst_57 : f32 to vector<32x64xf32>
    %158 = arith.addf %157, %156 : vector<32x64xf32>
    %cst_58 = arith.constant 5.000000e-01 : f32
    %159 = vector.broadcast %cst_58 : f32 to vector<32x64xf32>
    %160 = arith.mulf %159, %158 : vector<32x64xf32>
    %161 = arith.mulf %148, %160 : vector<32x64xf32>
    %c0_59 = arith.constant 0 : index
    %c0_60 = arith.constant 0 : index
    %c0_61 = arith.constant 0 : index
    %162 = vector.load %arg13[%c0_59, %c0_60, %c0_61] : memref<1x64x32xbf16, #tpu.memory_space<vmem>>, vector<1x64x32xbf16>
    %163 = vector.shape_cast %162 : vector<1x64x32xbf16> to vector<64x32xbf16>
    %164 = arith.truncf %161 : vector<32x64xf32> to vector<32x64xbf16>
    %cst_62 = arith.constant dense<0.000000e+00> : vector<32x32xf32>
    %165 = tpu.matmul %164, %163, %cst_62 {dimension_numbers = #tpu.dot_dimension_numbers<[1], [0], [0], [1], [0, 0, 1, 1], [], []>} : vector<32x64xbf16>, vector<64x32xbf16>, vector<32x32xf32> -> vector<32x32xf32>
    %166 = arith.addf %114, %165 : vector<32x32xf32>
    %c0_63 = arith.constant 0 : index
    %c0_64 = arith.constant 0 : index
    %c0_65 = arith.constant 0 : index
    %167 = vector.load %arg14[%c0_63, %c0_64, %c0_65] : memref<1x1x32xf32, #tpu.memory_space<vmem>>, vector<1x1x32xf32>
    %168 = vector.shape_cast %167 : vector<1x1x32xf32> to vector<1x32xf32>
    %169 = vector.broadcast %168 : vector<1x32xf32> to vector<32x32xf32>
    %170 = arith.addf %166, %169 : vector<32x32xf32>
    %c0_66 = arith.constant 0 : index
    %c0_67 = arith.constant 0 : index
    %171 = vector.load %arg15[%c0_66, %c0_67] : memref<32x32xf32, #tpu.memory_space<vmem>>, vector<32x32xf32>
    tpu.vector_store %arg15[%c0_66, %c0_67], %170 {strides = array<i32>} : memref<32x32xf32, #tpu.memory_space<vmem>>, vector<32x32xf32>,
    return
  }
  func.func @transform_0(%arg0: i32, %arg1: i32) -> (i32, i32) {
    %c0_i32 = arith.constant 0 : i32
    %c0_i32_0 = arith.constant 0 : i32
    return %arg0, %c0_i32 : i32, i32
  }
  func.func @transform_1(%arg0: i32, %arg1: i32) -> (i32, i32, i32) {
    %c0_i32 = arith.constant 0 : i32
    %c0_i32_0 = arith.constant 0 : i32
    %c0_i32_1 = arith.constant 0 : i32
    return %arg1, %c0_i32, %c0_i32_0 : i32, i32, i32
  }
  func.func @transform_2(%arg0: i32, %arg1: i32) -> (i32, i32, i32) {
    %c0_i32 = arith.constant 0 : i32
    %c0_i32_0 = arith.constant 0 : i32
    %c0_i32_1 = arith.constant 0 : i32
    return %arg1, %c0_i32, %c0_i32_0 : i32, i32, i32
  }
  func.func @transform_3(%arg0: i32, %arg1: i32) -> (i32, i32, i32) {
    %c0_i32 = arith.constant 0 : i32
    %c0_i32_0 = arith.constant 0 : i32
    %c0_i32_1 = arith.constant 0 : i32
    return %arg1, %c0_i32, %c0_i32_0 : i32, i32, i32
  }
  func.func @transform_4(%arg0: i32, %arg1: i32) -> (i32, i32, i32, i32) {
    %c0_i32 = arith.constant 0 : i32
    %c0_i32_0 = arith.constant 0 : i32
    %c0_i32_1 = arith.constant 0 : i32
    %c0_i32_2 = arith.constant 0 : i32
    return %arg1, %c0_i32, %c0_i32_0, %c0_i32_1 : i32, i32, i32, i32
  }
  func.func @transform_5(%arg0: i32, %arg1: i32) -> (i32, i32, i32) {
    %c0_i32 = arith.constant 0 : i32
    %c0_i32_0 = arith.constant 0 : i32
    %c0_i32_1 = arith.constant 0 : i32
    return %arg1, %c0_i32, %c0_i32_0 : i32, i32, i32
  }
  func.func @transform_6(%arg0: i32, %arg1: i32) -> (i32, i32, i32, i32) {
    %c0_i32 = arith.constant 0 : i32
    %c0_i32_0 = arith.constant 0 : i32
    %c0_i32_1 = arith.constant 0 : i32
    %c0_i32_2 = arith.constant 0 : i32
    return %arg1, %c0_i32, %c0_i32_0, %c0_i32_1 : i32, i32, i32, i32
  }
  func.func @transform_7(%arg0: i32, %arg1: i32) -> (i32, i32, i32) {
    %c0_i32 = arith.constant 0 : i32
    %c0_i32_0 = arith.constant 0 : i32
    %c0_i32_1 = arith.constant 0 : i32
    return %arg1, %c0_i32, %c0_i32_0 : i32, i32, i32
  }
  func.func @transform_8(%arg0: i32, %arg1: i32) -> (i32, i32, i32) {
    %c0_i32 = arith.constant 0 : i32
    %c0_i32_0 = arith.constant 0 : i32
    %c0_i32_1 = arith.constant 0 : i32
    return %arg1, %c0_i32, %c0_i32_0 : i32, i32, i32
  }
  func.func @transform_9(%arg0: i32, %arg1: i32) -> (i32, i32, i32) {
    %c0_i32 = arith.constant 0 : i32
    %c0_i32_0 = arith.constant 0 : i32
    %c0_i32_1 = arith.constant 0 : i32
    return %arg1, %c0_i32, %c0_i32_0 : i32, i32, i32
  }
  func.func @transform_10(%arg0: i32, %arg1: i32) -> (i32, i32, i32) {
    %c0_i32 = arith.constant 0 : i32
    %c0_i32_0 = arith.constant 0 : i32
    %c0_i32_1 = arith.constant 0 : i32
    return %arg1, %c0_i32, %c0_i32_0 : i32, i32, i32
  }
  func.func @transform_11(%arg0: i32, %arg1: i32) -> (i32, i32, i32) {
    %c0_i32 = arith.constant 0 : i32
    %c0_i32_0 = arith.constant 0 : i32
    %c0_i32_1 = arith.constant 0 : i32
    return %arg1, %c0_i32, %c0_i32_0 : i32, i32, i32
  }
  func.func @transform_12(%arg0: i32, %arg1: i32) -> (i32, i32, i32) {
    %c0_i32 = arith.constant 0 : i32
    %c0_i32_0 = arith.constant 0 : i32
    %c0_i32_1 = arith.constant 0 : i32
    return %arg1, %c0_i32, %c0_i32_0 : i32, i32, i32
  }
  func.func @transform_13(%arg0: i32, %arg1: i32) -> (i32, i32) {
    %c0_i32 = arith.constant 0 : i32
    %c0_i32_0 = arith.constant 0 : i32
    return %arg0, %c0_i32 : i32, i32
  }
}

</mosaic_0001>

<bundles_post_ra>
// kernel: transformer_forward.1
= control target key start
LH: loop header
LB: loop body
LE: loop exit
PB: predicated region body
PF: predicated region fallthrough
CT: control target
= control target key end

     0   :  { %s3220_s25 = smov 0   ;;  %s3222_s26 = smov 0   ;;  %s3753_s0 = inlined_call_operand.vmem [shape: f32[64,32], index: 0, kind: input, shape index: {}, may-alias: {0,13}]   ;;  %s3754_s1 = inlined_call_operand.vmem [shape: f32[2,1,32], index: 1, kind: input, shape index: {}]   ;;  %s3755_s2 = inlined_call_operand.vmem [shape: f32[2,1,32], index: 2, kind: input, shape index: {}]   ;;  %s3756_s3 = inlined_call_operand.vmem [shape: bf16[2,32,96], index: 3, kind: input, shape index: {}]   ;;  %s3757_s4 = inlined_call_operand.vmem [shape: bf16[2,4,8,32], index: 4, kind: input, shape index: {}]   ;;  %s3758_s5 = inlined_call_operand.vmem [shape: f32[2,1,32], index: 5, kind: input, shape index: {}]   ;;  %s3759_s6 = inlined_call_operand.vmem [shape: bf16[2,4,16,16], index: 6, kind: input, shape index: {}]   ;;  %s3760_s7 = inlined_call_operand.vmem [shape: f32[2,1,32], index: 7, kind: input, shape index: {}]   ;;  %s3761_s8 = inlined_call_operand.vmem [shape: f32[2,1,32], index: 8, kind: input, shape index: {}]   ;;  %s3762_s9 = inlined_call_operand.vmem [shape: bf16[2,32,64], index: 9, kind: input, shape index: {}]   ;;  %s3763_s10 = inlined_call_operand.vmem [shape: f32[2,1,64], index: 10, kind: input, shape index: {}]   ;;  %s3764_s11 = inlined_call_operand.vmem [shape: bf16[2,64,32], index: 11, kind: input, shape index: {}]   ;;  %s3765_s12 = inlined_call_operand.vmem [shape: f32[2,1,32], index: 12, kind: input, shape index: {}]   ;;  %s3766_s13 = inlined_call_operand.vmem [shape: f32[64,32], index: 13, kind: output, shape index: {}, may-alias: {0,13}]  }
   0x1   :  { %3772 = sst [smem:[#allocation9_spill]] %s3753_s0  ;;  %s3224_s27 = smov 0  }
   0x2   :  { %3773 = sst [smem:[#allocation10_spill]] %s3756_s3  ;;  %s3226_s28 = smov 0  }
   0x3   :  { %3774 = sst [smem:[#allocation11_spill]] %s3757_s4  ;;  %s3228_s29 = smov 0  }
   0x4   :  { %3775 = sst [smem:[#allocation12_spill]] %s3759_s6 }
   0x5   :  { %3776 = sst [smem:[#allocation13_spill]] %s3761_s8 }
   0x6   :  { %3777 = sst [smem:[#allocation14_spill]] %s3766_s13 }
   0x7 LB: > { %3778 = sst [smem:[#allocation2_spill]] %s3125_s25  ;;  %s32_s30 = sadd.s32 1, %s3133_s27  ;;  %s3141_s29 = sphi %s3228_s29, %s23_s29   ;;  %s3137_s28 = sphi %s3226_s28, %s3803_s28   ;;  %s3133_s27 = sphi %s3224_s27, %s3802_s27   ;;  %s3129_s26 = sphi %s3222_s26, %s3801_s26   ;;  %s3125_s25 = sphi %s3220_s25, %s3800_s25  }
   0x8   : > { %3779 = sst [smem:[#allocation3_spill]] %s3133_s27  ;;  %s35_s14 = sadd.s32 1, %s3137_s28 }
   0x9   : > { %3780 = sst [smem:[#allocation4_spill]] %s3137_s28  ;;  %p33_p0 = scmp.ge.s32.totalorder %s32_s30, 2 }
   0xa   : > { %3781 = sst [smem:[#allocation5_spill]] %s3141_s29  ;;  %p2629_p1 = scmp.ge.s32.totalorder %s3141_s29, 1 }
   0xb   : > { %p506_p2 = scmp.lt.s32.totalorder %s3141_s29, 5  ;;  %s3805_s30 = smov (%p33_p0, %s32_s30), 0 }
   0xc   : > { %3782 = sst [smem:[#allocation6_spill]] %s3805_s30  ;;  %s3807_s14 = smov (!%p33_p0, %s35_s14), %s3137_s28 }
   0xd   : > { %p507_p3 = pnand %p2629_p1, %p506_p2  ;;  %p37_p4 = scmp.ge.s32.totalorder %s3807_s14, 2 }
   0xf   : > { %s3809_s14 = smov (%p37_p4, %s3807_s14), 0  ;;  %510 = sbr.rel (%p507_p3) target bundleno = 3204 (0xc84), region = 72 }
  0x10   : > { %3783 = sst [smem:[#allocation7_spill]] %s3809_s14 }
  0x16   : > { %s2630_s15 = sshll.u32 %s3129_s26, 2  ;;  %p602_p5 = scmp.lt.s32.totalorder %s3125_s25, 1 }
  0x17   : > { %p597_p6 = scmp.lt.s32.totalorder %s2630_s15, 7  ;;  %s3784_s0 = sld [smem:[#allocation9_spill]] }
  0x18   : > { %s3254_s16 = scalar_select %p602_p5, %s3125_s25, 1 }
  0x19   : > { %s3811_s15 = smov (!%p597_p6, %s2630_s15), 7  ;;  %s3785_s3 = sld [smem:[#allocation10_spill]] }
  0x1a   : > { %s2631_s23 = sshll.u32 %s3811_s15, 3  ;;  %s2692_s24 = sshll.u32 %s3254_s16, 4 }
  0x1b   : > { %s3786_s4 = sld [smem:[#allocation11_spill]]  ;;  %s2694_s15 = sshll.u32 %s3254_s16, 5 }
  0x1c   : > { %s3788_s6 = sld [smem:[#allocation12_spill]]  ;;  %s639_s20 = scalar_lea.vmem %s3763_s10, %s3254_s16 }
  0x1d   : > { %s600_s30 = scalar_lea.vmem %s3784_s0, %s2631_s23  ;;  %s3308_s14 = scalar_lea.vmem %s3764_s11, %s2694_s15 }
  0x1e   : > { %s3790_s13 = sld [smem:[#allocation14_spill]] }
  0x1f   : > { %s3271_s29 = scalar_lea.vmem %s3785_s3, %s2692_s24 }
  0x21   : > { %s3276_s17 = scalar_lea.vmem %s3786_s4, %s2692_s24  ;;  %s3791_s4 = sld [smem:[#allocation2_spill]] }
  0x22   : > { %3787 = sst [smem:[#allocation8_spill]] %s3276_s17  ;;  %s3290_s27 = scalar_lea.vmem %s3788_s6, %s2694_s15 }
  0x23   : > { %s3299_s17 = scalar_lea.vmem %s3762_s9, %s2692_s24  ;;  %s647_s6 = scalar_lea.vmem %s3765_s12, %s3254_s16 }
  0x24   : > { %s3317_s8 = scalar_lea.vmem %s3790_s13, %s2631_s23 }
  0x27   : > { %p2644_p7 = scmp.ne.s32.totalorder %s3791_s4, 0 }
  0x28   : > { %v659_v0 = vld [vmem:[%s600_s30] sm:$0xff] (!%p2644_p7)  ;;  %v660_v1 = vld [vmem:[%s600_s30 + $0x8] sm:$0xff] (!%p2644_p7)  ;;  %v661_v2 = vld [vmem:[%s600_s30 + $0x10] sm:$0xff] (!%p2644_p7)  ;;  %vm663_vm0 = vcmask (!%p2644_p7), 261120  }
  0x29   : > { %658 = sbr.rel (%p2644_p7) target bundleno = 48 (0x30), region = 76  ;;  %v662_v3 = vld [vmem:[%s600_s30 + $0x18] sm:$0xff] (!%p2644_p7) }
  0x2a   : > { %664 = vst.msk [vmem:[%s3317_s8] sm:$0xff] (!%p2644_p7), %vm663_vm0, %v659_v0  ;;  %665 = vst.msk [vmem:[%s3317_s8 + $0x8] sm:$0xff] (!%p2644_p7), %vm663_vm0, %v660_v1 }
  0x2b   : > { %666 = vst.msk [vmem:[%s3317_s8 + $0x10] sm:$0xff] (!%p2644_p7), %vm663_vm0, %v661_v2  ;;  %667 = vst.msk [vmem:[%s3317_s8 + $0x18] sm:$0xff] (!%p2644_p7), %vm663_vm0, %v662_v3 }
  0x30 PF: > { %vm674_vm1 = vcmask 261120   ;;  %v3003_v32 = vld [vmem:[%s3271_s29] sm:$0xff]   ;;  %v3004_v33 = vld [vmem:[%s3271_s29 + $0x8] sm:$0xff]   ;;  %s3792_s23 = scalar_lea.vmem %s3754_s1, %s3254_s16  ;;  %s3793_s13 = scalar_lea.vmem %s3755_s2, %s3254_s16  ;;  %vm3144_vm2 = vmmov 0   ;;  %vm884_vm3 = vcmask 64512   ;;  %vm1082_vm4 = vcmask 130048  }
  0x31   : > { %v668_v4 = vld [vmem:[%s3317_s8] sm:$0xff]  ;;  %v669_v6 = vld [vmem:[%s3317_s8 + $0x8] sm:$0xff]  ;;  %2774 = vmatprep.subr.bf16.mxu1 %v3003_v32  ;;  %s3145_s25 = smov 112   ;;  %s3146_s19 = smov 120   ;;  %vm1865_vm5 = vcmask 1043456   ;;  %vm2359_vm6 = vcmask 523264  }
  0x32   : > { %v670_v5 = vld [vmem:[%s3317_s8 + $0x10] sm:$0xff]  ;;  %v675_v7 = vsel %vm674_vm1, %v668_v4, 0.0  ;;  %v671_v9 = vld [vmem:[%s3317_s8 + $0x18] sm:$0xff]  ;;  %v678_v10 = vsel %vm674_vm1, %v669_v6, 0.0  ;;  %2775 = vmatpush3.bf16.msra.mxu1 %v3003_v32  ;;  %v2645_v48 = vld [vmem:[%s3792_s23] ss:$0 sm:$0xff]  ;;  %s3795_s3 = scalar_lea.vmem %s3758_s5, %s3254_s16  ;;  %s3796_s4 = scalar_lea.vmem %s3760_s7, %s3254_s16 }
  0x33   : > { %v681_v8 = vsel %vm674_vm1, %v670_v5, 0.0  ;;  %676 = vadd.xlane.f32.xlu0 %v675_v7  ;;  %v684_v11 = vsel %vm674_vm1, %v671_v9, 0.0  ;;  %2776 = vmatprep.subr.bf16.mxu1 %v3004_v33  ;;  %v2646_v54 = vld [vmem:[%s3793_s13] ss:$0 sm:$0xff]  ;;  %s3147_s18 = smov 104   ;;  %s3148_s22 = smov 96  }
  0x34   : > { %682 = vadd.xlane.f32.xlu1 %v681_v8  ;;  %s3794_s21 = sld [smem:[#allocation8_spill]]  ;;  %s3797_s23 = sld [smem:[#allocation13_spill]] }
  0x36   : > { %2777 = vmatpush3.bf16.msra.mxu1 %v3004_v33 }
  0x37   : > { %679 = vadd.xlane.f32.xlu0 %v678_v10 }
  0x38   : > { %685 = vadd.xlane.f32.xlu1 %v684_v11 }
  0x3a   : > { %s3798_s24 = scalar_lea.vmem %s3797_s23, %s3254_s16 }
  0xc0   : > { %v677_v12 = vpop.xlane.xlu0 %676 }
  0xc1   : > { %v683_v13 = vpop.xlane.xlu1 %682  ;;  %v688_v14 = vmul.f32 0.03125, %v677_v12 }
  0xc2   : > { %v690_v15 = vmul.f32 0.03125, %v683_v13 }
  0xc3   : > { %v692_v16 = vsub.f32 %v668_v4, %v688_v14 }
  0xc4   : > { %v694_v17 = vsub.f32 %v670_v5, %v690_v15  ;;  %v680_v18 = vpop.xlane.xlu0 %679  ;;  %v3143_v5 = vmov 0.0  }
  0xc5   : > { %v686_v19 = vpop.xlane.xlu1 %685  ;;  %v689_v20 = vmul.f32 0.03125, %v680_v18  ;;  %v696_v22 = vmul.f32 %v692_v16, %v692_v16  ;;  %2782 = vmatprep.subr.bf16.mxu1 %v3143_v5  ;;  %2788 = vmatprep.subr.bf16.mxu0 %v3143_v5 }
  0xc6   : > { %v691_v21 = vmul.f32 0.03125, %v686_v19  ;;  %v698_v23 = vmul.f32 %v694_v17, %v694_v17  ;;  %2790 = vmatprep.mubr.msk.bf16.mxu0 %vm3144_vm2, %v3143_v5 }
  0xc7   : > { %v693_v24 = vsub.f32 %v669_v6, %v689_v20  ;;  %v700_v26 = vsel %vm674_vm1, %v696_v22, 0.0 }
  0xc8   : > { %v695_v25 = vsub.f32 %v671_v9, %v691_v21  ;;  %701 = vadd.xlane.f32.xlu0 %v700_v26  ;;  %v706_v27 = vsel %vm674_vm1, %v698_v23, 0.0 }
  0xc9   : > { %v697_v28 = vmul.f32 %v693_v24, %v693_v24 }
  0xca   : > { %v699_v29 = vmul.f32 %v695_v25, %v695_v25 }
  0xcb   : > { %v703_v30 = vsel %vm674_vm1, %v697_v28, 0.0 }
  0xcc   : > { %707 = vadd.xlane.f32.xlu0 %v706_v27  ;;  %704 = vadd.xlane.f32.xlu1 %v703_v30  ;;  %v709_v31 = vsel %vm674_vm1, %v699_v29, 0.0 }
  0xd0   : > { %710 = vadd.xlane.f32.xlu1 %v709_v31  ;;  %v3404_v31 = vld [vmem:[%s3290_s27] sm:$0xff]  }
  0xd1   : > { %v2699_v32 = vunpack.c.l.bf16 %v3404_v31  ;;  %v2700_v33 = vunpack.c.h.bf16 %v3404_v31 }
 0x155   : > { %v702_v34 = vpop.xlane.xlu0 %701 }
 0x156   : > { %v712_v35 = vmul.f32 0.03125, %v702_v34 }
 0x158   : > { %v716_v36 = vadd.f32 1e-05, %v712_v35 }
 0x159   : > { %v705_v37 = vpop.xlane.xlu1 %704  ;;  %v708_v38 = vpop.xlane.xlu0 %707 }
 0x15a   : > { %3011 = vrsqrt.f32 %v716_v36  ;;  %v713_v39 = vmul.f32 0.03125, %v705_v37  ;;  %v714_v40 = vmul.f32 0.03125, %v708_v38 }
 0x15c   : > { %v717_v41 = vadd.f32 1e-05, %v713_v39  ;;  %v718_v42 = vadd.f32 1e-05, %v714_v40 }
 0x15d   : > { %v711_v43 = vpop.xlane.xlu1 %710 }
 0x15e   : > { %3013 = vrsqrt.f32 %v717_v41  ;;  %v715_v44 = vmul.f32 0.03125, %v711_v43  ;;  %v3418_v43 = vld [vmem:[%s3290_s27 + $0x10] sm:$0xff]  }
 0x15f   : > { %3015 = vrsqrt.f32 %v718_v42  ;;  %v3415_v42 = vld [vmem:[%s3290_s27 + $0x8] sm:$0xff]  }
 0x160   : > { %v719_v45 = vadd.f32 1e-05, %v715_v44  ;;  %v2703_v44 = vunpack.c.l.bf16 %v3415_v42 }
 0x162   : > { %3017 = vrsqrt.f32 %v719_v45  ;;  %v2707_v45 = vunpack.c.l.bf16 %v3418_v43 }
 0x164   : > { %v3012_v46 = vpop.eup %3011 }
 0x165   : > { %v724_v47 = vmul.f32 %v3012_v46, %v692_v16  ;;  %v2704_v46 = vunpack.c.h.bf16 %v3415_v42 }
 0x167   : > { %v734_v52 = vmul.f32 %v2645_v48, %v724_v47 }
 0x168   : > { %v3014_v49 = vpop.eup %3013 }
 0x169   : > { %v3016_v50 = vpop.eup %3015  ;;  %v725_v51 = vmul.f32 %v3014_v49, %v693_v24  ;;  %v744_v58 = vadd.f32 %v2646_v54, %v734_v52 }
 0x16a   : > { %v726_v53 = vmul.f32 %v3016_v50, %v694_v17 }
 0x16b   : > { %v735_v55 = vmul.f32 %v2645_v48, %v725_v51 }
 0x16c   : > { %v3018_v56 = vpop.eup %3017  ;;  %v736_v60 = vmul.f32 %v2645_v48, %v726_v53 }
 0x16d   : > { %v727_v57 = vmul.f32 %v3018_v56, %v695_v25  ;;  %v745_v59 = vadd.f32 %v2646_v54, %v735_v55  ;;  %v3428_v55 = vld [vmem:[%s3290_s27 + $0x18] sm:$0xff]   ;;  %s3149_s27 = smov 64  }
 0x16e   : > { %v746_v63 = vadd.f32 %v2646_v54, %v736_v60 }
 0x16f   : > { %v752_v61 = vpack.c.bf16 %v745_v59, %v744_v58  ;;  %v737_v62 = vmul.f32 %v2645_v48, %v727_v57  ;;  %v2708_v57 = vunpack.c.h.bf16 %v3418_v43 }
 0x171   : > { %2778 = vmatprep.mubr.msk.bf16.mxu1 %vm674_vm1, %v752_v61  ;;  %v747_v0 = vadd.f32 %v2646_v54, %v737_v62  ;;  %v2711_v62 = vunpack.c.l.bf16 %v3428_v55 }
 0x173   : > { %v753_v1 = vpack.c.bf16 %v747_v0, %v746_v63 }
 0x175   : > { %2779 = vmatmul.mubr.msk.bf16.vlgmr.msra.gmra.mrb[0].mxu1 %vm674_vm1, %v753_v1  ;;  %v2712_v1 = vunpack.c.h.bf16 %v3428_v55 }
 0x176   : > { %2784 = vmatprep.mubr.msk.bf16.mxu1 %vm3144_vm2, %v3143_v5 }
 0x248   : > { %v2780_v2 = vpop.f32.mrb[0].mxu1 }
 0x249   : > { %v806_v3 = vpop.f32.mrb[1].mxu1 }
 0x24a   : > { %v2781_v4 = vpop.f32.mrb[2].mxu1 }
 0x24b   : > { %v809_v6 = vpop.f32.mrb[3].mxu1  ;;  %v3356_v7 = vpack.i.bf16 %v2781_v4, %v2780_v2  ;;  %v3360_v10 = vpack.c.bf16 %v2781_v4, %v2780_v2 }
 0x24c   : > { %v2978_v8 = vpack.i.bf16 %v809_v6, %v806_v3  ;;  %v3358_v9 = vpack.c.bf16 %v809_v6, %v806_v3 }
 0x24e   : > { %2979 = vrot.lane.b32.xlu1 %v2978_v8, %s3145_s25  ;;  %2974 = vrot.lane.b32.xlu0 %v2978_v8, %s3146_s19 }
 0x252   : > { %2984 = vrot.lane.b32.xlu1 %v2978_v8, %s3147_s18 }
 0x256   : > { %882 = vrot.lane.b32.xlu1 %v3358_v9, %s3148_s22 }
 0x2c0   : > { %v2980_v11 = vpop.permute.xlu1 %2979  ;;  %v2975_v12 = vpop.permute.xlu0 %2974 }
 0x2c1   : > { %v2982_v13 = vunpack.i.h.bf16 %v2980_v11  ;;  %v2981_v14 = vunpack.i.l.bf16 %v2980_v11  ;;  %v2977_v15 = vunpack.i.h.bf16 %v2975_v12  ;;  %v2976_v16 = vunpack.i.l.bf16 %v2975_v12 }
 0x2c3   : > { %v3367_v17 = vpack.c.bf16 %v2982_v13, %v2981_v14  ;;  %v3369_v18 = vpack.c.bf16 %v2977_v15, %v2976_v16 }
 0x2c4   : > { %v2985_v19 = vpop.permute.xlu1 %2984 }
 0x2c5   : > { %v2987_v20 = vunpack.i.h.bf16 %v2985_v19  ;;  %v2986_v21 = vunpack.i.l.bf16 %v2985_v19  ;;  %933 = vrot.lane.b32.xlu0 %v3369_v18, %s3148_s22  ;;  %983 = vrot.lane.b32.xlu1 %v3367_v17, %s3148_s22 }
 0x2c7   : > { %v3375_v22 = vpack.c.bf16 %v2987_v20, %v2986_v21 }
 0x2c8   : > { %v883_v23 = vpop.permute.xlu1 %882 }
 0x2c9   : > { %v889_v24 = vsel %vm884_vm3, %v883_v23, 0  ;;  %1033 = vrot.lane.b32.xlu0 %v3375_v22, %s3148_s22 }
 0x2ca   : > { %2783 = vmatpush3.bf16.xpose.msra.mxu1 %v889_v24 }
 0x2cb   : > { %2794 = vmatprep.subr.bf16.mxu1 %v3143_v5 }
 0x2d1   : > { %2785 = vmatmul.mubr.msk.bf16.vlgmr.msra.gmra.mrb[4].mxu1 %vm884_vm3, %v3358_v9 }
 0x2d2   : > { %2796 = vmatprep.mubr.msk.bf16.mxu1 %vm3144_vm2, %v3143_v5 }
 0x337   : > { %v934_v25 = vpop.permute.xlu0 %933  ;;  %v984_v26 = vpop.permute.xlu1 %983 }
 0x338   : > { %v989_v27 = vsel %vm884_vm3, %v984_v26, 0  ;;  %v939_v28 = vsel %vm884_vm3, %v934_v25, 0 }
 0x339   : > { %2789 = vmatpush3.bf16.xpose.msra.mxu0 %v939_v28  ;;  %2795 = vmatpush3.bf16.xpose.msra.mxu1 %v989_v27 }
 0x33a   : > { %2800 = vmatprep.subr.bf16.mxu0 %v3143_v5  ;;  %2806 = vmatprep.subr.bf16.mxu1 %v3143_v5 }
 0x33b   : > { %v1034_v29 = vpop.permute.xlu0 %1033 }
 0x33c   : > { %v1039_v30 = vsel %vm884_vm3, %v1034_v29, 0 }
 0x340   : > { %2791 = vmatmul.mubr.msk.bf16.vlgmr.msra.gmra.mrb[0].mxu0 %vm884_vm3, %v3369_v18  ;;  %2797 = vmatmul.mubr.msk.bf16.vlgmr.msra.gmra.mrb[8].mxu1 %vm884_vm3, %v3367_v17 }
 0x341   : > { %2801 = vmatpush3.bf16.xpose.msra.mxu0 %v1039_v30  ;;  %2802 = vmatprep.mubr.msk.bf16.mxu0 %vm3144_vm2, %v3143_v5 }
 0x342   : > { %2812 = vmatprep.subr.bf16.mxu0 %v3143_v5  ;;  %2808 = vmatprep.mubr.msk.bf16.mxu1 %vm3144_vm2, %v3143_v5 }
 0x348   : > { %2803 = vmatmul.mubr.msk.bf16.vlgmr.msra.gmra.mrb[4].mxu0 %vm884_vm3, %v3375_v22 }
 0x349   : > { %2814 = vmatprep.mubr.msk.bf16.mxu0 %vm3144_vm2, %v3143_v5 }
 0x3a4   : > { %v925_v34 = vpop.f32.mrb[4].mxu1 }
 0x3a5   : > { %v926_v35 = vadd.f32 %v2699_v32, %v925_v34  ;;  %v2786_v36 = vpop.f32.mrb[5].mxu1 }
 0x3a6   : > { %v928_v37 = vpop.f32.mrb[6].mxu1 }
 0x3a7   : > { %v929_v38 = vadd.f32 %v2700_v33, %v928_v37  ;;  %v2787_v39 = vpop.f32.mrb[7].mxu1  ;;  %v1083_v40 = vsel %vm1082_vm4, %v926_v35, -inf }
 0x3a8   : > { %1084 = vmax.xlane.f32.xlu1 %v1083_v40 }
 0x3a9   : > { %v1086_v41 = vsel %vm1082_vm4, %v929_v38, -inf }
 0x3aa   : > { %1087 = vmax.xlane.f32.xlu0 %v1086_v41 }
 0x413   : > { %v975_v47 = vpop.f32.mrb[0].mxu0  ;;  %v1025_v48 = vpop.f32.mrb[8].mxu1 }
 0x414   : > { %v976_v49 = vadd.f32 %v2703_v44, %v975_v47  ;;  %v1026_v50 = vadd.f32 %v2707_v45, %v1025_v48  ;;  %v2792_v51 = vpop.f32.mrb[1].mxu0  ;;  %v2798_v52 = vpop.f32.mrb[9].mxu1 }
 0x415   : > { %v978_v53 = vpop.f32.mrb[2].mxu0  ;;  %v1028_v54 = vpop.f32.mrb[10].mxu1 }
 0x416   : > { %v979_v56 = vadd.f32 %v2704_v46, %v978_v53  ;;  %v2793_v58 = vpop.f32.mrb[3].mxu0  ;;  %v2799_v59 = vpop.f32.mrb[11].mxu1  ;;  %v1089_v60 = vsel %vm1082_vm4, %v976_v49, -inf  ;;  %v1095_v61 = vsel %vm1082_vm4, %v1026_v50, -inf  ;;  %v1029_v63 = vadd.f32 %v2708_v57, %v1028_v54 }
 0x417   : > { %1090 = vmax.xlane.f32.xlu0 %v1089_v60  ;;  %1096 = vmax.xlane.f32.xlu1 %v1095_v61 }
 0x418   : > { %v1092_v0 = vsel %vm1082_vm4, %v979_v56, -inf  ;;  %v1098_v13 = vsel %vm1082_vm4, %v1029_v63, -inf }
 0x41b   : > { %v1075_v2 = vpop.f32.mrb[4].mxu0  ;;  %1093 = vmax.xlane.f32.xlu0 %v1092_v0 }
 0x41c   : > { %v1076_v3 = vadd.f32 %v2711_v62, %v1075_v2  ;;  %v2804_v4 = vpop.f32.mrb[5].mxu0 }
 0x41d   : > { %v1078_v6 = vpop.f32.mrb[6].mxu0 }
 0x41e   : > { %v1079_v8 = vadd.f32 %v2712_v1, %v1078_v6  ;;  %v2805_v11 = vpop.f32.mrb[7].mxu0  ;;  %v1101_v12 = vsel %vm1082_vm4, %v1076_v3, -inf }
 0x41f   : > { %1102 = vmax.xlane.f32.xlu1 %v1101_v12  ;;  %1099 = vmax.xlane.f32.xlu0 %v1098_v13 }
 0x420   : > { %v1104_v14 = vsel %vm1082_vm4, %v1079_v8, -inf }
 0x423   : > { %1105 = vmax.xlane.f32.xlu0 %v1104_v14 }
 0x430   : > { %2989 = vrot.lane.b32.xlu1 %v3356_v7, %s3146_s19 }
 0x434   : > { %2999 = vrot.lane.b32.xlu1 %v3356_v7, %s3147_s18 }
 0x435   : > { %v1085_v20 = vpop.xlane.xlu1 %1084 }
 0x436   : > { %v1107_v21 = vsub.f32 %v926_v35, %v1085_v20 }
 0x437   : > { %v1088_v15 = vpop.xlane.xlu0 %1087 }
 0x438   : > { %1222 = vrot.lane.b32.xlu1 %v3369_v18, %s3149_s27  ;;  %v1108_v16 = vsub.f32 %v929_v38, %v1088_v15  ;;  %v1115_v23 = vmul.f32 1.442695, %v1107_v21 }
 0x439   : > { %2994 = vrot.lane.b32.xlu0 %v3356_v7, %s3145_s25 }
 0x43a   : > { %v1117_v19 = vmul.f32 1.442695, %v1108_v16 }
 0x43c   : > { %1269 = vrot.lane.b32.xlu1 %v3367_v17, %s3149_s27  ;;  %3019 = vpow2.f32 %v1117_v19 }
 0x43d   : > { %1175 = vrot.lane.b32.xlu0 %v3358_v9, %s3149_s27  ;;  %3021 = vpow2.f32 %v1115_v23 }
 0x440   : > { %1316 = vrot.lane.b32.xlu1 %v3375_v22, %s3149_s27 }
 0x446   : > { %v3461_v18 = vpop.eup %3019 }
 0x447   : > { %v1134_v7 = vsel %vm1082_vm4, %v3461_v18, 0.0  ;;  %v3465_v17 = vpop.eup %3021 }
 0x448   : > { %v1131_v9 = vsel %vm1082_vm4, %v3465_v17, 0.0 }
 0x45c   : > { %1135 = vadd.xlane.f32.xlu0 %v1134_v7 }
 0x464   : > { %1132 = vadd.xlane.f32.xlu1 %v1131_v9 }
 0x4a4   : > { %v1091_v22 = vpop.xlane.xlu0 %1090  ;;  %v1097_v24 = vpop.xlane.xlu1 %1096 }
 0x4a5   : > { %v1109_v25 = vsub.f32 %v976_v49, %v1091_v22  ;;  %v1111_v26 = vsub.f32 %v1026_v50, %v1097_v24 }
 0x4a7   : > { %v1119_v27 = vmul.f32 1.442695, %v1109_v25  ;;  %v1123_v28 = vmul.f32 1.442695, %v1111_v26 }
 0x4a8   : > { %v1094_v29 = vpop.xlane.xlu0 %1093 }
 0x4a9   : > { %3023 = vpow2.f32 %v1119_v27  ;;  %v1110_v30 = vsub.f32 %v979_v56, %v1094_v29 }
 0x4aa   : > { %3025 = vpow2.f32 %v1123_v28 }
 0x4ab   : > { %v1121_v34 = vmul.f32 1.442695, %v1110_v30 }
 0x4ac   : > { %v1100_v35 = vpop.xlane.xlu0 %1099  ;;  %v1103_v36 = vpop.xlane.xlu1 %1102 }
 0x4ad   : > { %3027 = vpow2.f32 %v1121_v34  ;;  %v1112_v37 = vsub.f32 %v1029_v63, %v1100_v35  ;;  %v1113_v38 = vsub.f32 %v1076_v3, %v1103_v36 }
 0x4af   : > { %v1125_v39 = vmul.f32 1.442695, %v1112_v37  ;;  %v1127_v40 = vmul.f32 1.442695, %v1113_v38 }
 0x4b0   : > { %v1106_v41 = vpop.xlane.xlu0 %1105  ;;  %v2990_v47 = vpop.permute.xlu1 %2989 }
 0x4b1   : > { %3029 = vpow2.f32 %v1125_v39  ;;  %v1114_v48 = vsub.f32 %v1079_v8, %v1106_v41  ;;  %v2992_v8 = vunpack.i.h.bf16 %v2990_v47  ;;  %v2991_v11 = vunpack.i.l.bf16 %v2990_v47 }
 0x4b2   : > { %3031 = vpow2.f32 %v1127_v40 }
 0x4b3   : > { %v3469_v49 = vpop.eup %3023  ;;  %v1129_v50 = vmul.f32 1.442695, %v1114_v48  ;;  %v3489_v12 = vpack.c.bf16 %v2992_v8, %v2991_v11 }
 0x4b4   : > { %v2995_v51 = vpop.permute.xlu0 %2994  ;;  %v3000_v52 = vpop.permute.xlu1 %2999  ;;  %v1137_v53 = vsel %vm1082_vm4, %v3469_v49, 0.0 }
 0x4b5   : > { %3033 = vpow2.f32 %v1129_v50  ;;  %1138 = vadd.xlane.f32.xlu0 %v1137_v53  ;;  %v3473_v54 = vpop.eup %3025  ;;  %v3002_v13 = vunpack.i.h.bf16 %v3000_v52  ;;  %v3001_v14 = vunpack.i.l.bf16 %v3000_v52  ;;  %v2997_v15 = vunpack.i.h.bf16 %v2995_v51 }
 0x4b6   : > { %v1143_v61 = vsel %vm1082_vm4, %v3473_v54, 0.0  ;;  %v2996_v16 = vunpack.i.l.bf16 %v2995_v51 }
 0x4b7   : > { %v3475_v56 = vpop.eup %3027  ;;  %v3493_v19 = vpack.c.bf16 %v3002_v13, %v3001_v14 }
 0x4b8   : > { %v1176_v58 = vpop.permute.xlu0 %1175  ;;  %v1223_v59 = vpop.permute.xlu1 %1222  ;;  %v1140_v60 = vsel %vm1082_vm4, %v3475_v56, 0.0  ;;  %v3497_v20 = vpack.c.bf16 %v2997_v15, %v2996_v16 }
 0x4b9   : > { %2807 = vmatpush3.bf16.msra.mxu1 %v1176_v58  ;;  %1141 = vadd.xlane.f32.xlu1 %v1140_v60 }
 0x4ba   : > { %1144 = vadd.xlane.f32.xlu0 %v1143_v61  ;;  %2813 = vmatpush3.bf16.msra.mxu0 %v1223_v59 }
 0x4bb   : > { %v3030_v63 = vpop.eup %3029  ;;  %2818 = vmatprep.subr.bf16.mxu1 %v3143_v5  ;;  %2824 = vmatprep.subr.bf16.mxu0 %v3143_v5 }
 0x4bc   : > { %v3483_v0 = vpop.eup %3031  ;;  %v1146_v2 = vsel %vm1082_vm4, %v3030_v63, 0.0  ;;  %v1270_v21 = vpop.permute.xlu1 %1269 }
 0x4bd   : > { %1147 = vadd.xlane.f32.xlu1 %v1146_v2  ;;  %v1149_v3 = vsel %vm1082_vm4, %v3483_v0, 0.0 }
 0x4be   : > { %1150 = vadd.xlane.f32.xlu0 %v1149_v3 }
 0x4bf   : > { %v3034_v4 = vpop.eup %3033 }
 0x4c0   : > { %v1152_v6 = vsel %vm1082_vm4, %v3034_v4, 0.0  ;;  %v1317_v23 = vpop.permute.xlu1 %1316 }
 0x4c1   : > { %1153 = vadd.xlane.f32.xlu1 %v1152_v6 }
 0x4d2   : > { %1418 = vrot.lane.b32.xlu1 %v3489_v12, %s3148_s22 }
 0x4d4   : > { %1368 = vrot.lane.b32.xlu0 %v3360_v10, %s3148_s22 }
 0x4d6   : > { %1518 = vrot.lane.b32.xlu1 %v3493_v19, %s3148_s22 }
 0x4d8   : > { %1468 = vrot.lane.b32.xlu0 %v3497_v20, %s3148_s22 }
 0x4e9   : > { %v1136_v7 = vpop.xlane.xlu0 %1135 }
 0x4ea   : > { %3035 = vrcp.f32 %v1136_v7 }
 0x4f1   : > { %v1133_v9 = vpop.xlane.xlu1 %1132 }
 0x4f2   : > { %3037 = vrcp.f32 %v1133_v9 }
 0x4f4   : > { %v3036_v22 = vpop.eup %3035 }
 0x4f5   : > { %v1164_v25 = vmul.f32 %v3036_v22, %v3461_v18 }
 0x4fc   : > { %v3038_v24 = vpop.eup %3037 }
 0x4fd   : > { %v1163_v26 = vmul.f32 %v3038_v24, %v3465_v17 }
 0x4ff   : > { %v1171_v27 = vpack.c.bf16 %v1164_v25, %v1163_v26 }
 0x501   : > { %2809 = vmatmul.mubr.msk.bf16.vlgmr.msra.gmra.mrb[12].mxu1 %vm1082_vm4, %v1171_v27 }
 0x502   : > { %2819 = vmatpush3.bf16.msra.mxu1 %v1270_v21  ;;  %2820 = vmatprep.mubr.msk.bf16.mxu1 %vm3144_vm2, %v3143_v5 }
 0x503   : > { %2830 = vmatprep.subr.bf16.mxu1 %v3143_v5 }
 0x542   : > { %v1139_v28 = vpop.xlane.xlu0 %1138 }
 0x543   : > { %3039 = vrcp.f32 %v1139_v28 }
 0x546   : > { %v1142_v29 = vpop.xlane.xlu1 %1141 }
 0x547   : > { %v1145_v30 = vpop.xlane.xlu0 %1144  ;;  %3041 = vrcp.f32 %v1142_v29 }
 0x548   : > { %3043 = vrcp.f32 %v1145_v30 }
 0x54a   : > { %v1148_v34 = vpop.xlane.xlu1 %1147 }
 0x54b   : > { %v1151_v35 = vpop.xlane.xlu0 %1150  ;;  %3045 = vrcp.f32 %v1148_v34 }
 0x54c   : > { %3047 = vrcp.f32 %v1151_v35 }
 0x54d   : > { %v3040_v17 = vpop.eup %3039 }
 0x54e   : > { %v1154_v18 = vpop.xlane.xlu1 %1153  ;;  %v1165_v37 = vmul.f32 %v3040_v17, %v3469_v49 }
 0x54f   : > { %3049 = vrcp.f32 %v1154_v18  ;;  %v1369_v51 = vpop.permute.xlu0 %1368 }
 0x551   : > { %v3042_v36 = vpop.eup %3041 }
 0x552   : > { %v1166_v38 = vmul.f32 %v3042_v36, %v3475_v56  ;;  %v3044_v39 = vpop.eup %3043  ;;  %v1374_v56 = vsel %vm884_vm3, %v1369_v51, 0 }
 0x553   : > { %v1167_v47 = vmul.f32 %v3044_v39, %v3473_v54  ;;  %v1419_v54 = vpop.permute.xlu1 %1418  ;;  %v1469_v60 = vpop.permute.xlu0 %1468 }
 0x554   : > { %v1172_v40 = vpack.c.bf16 %v1166_v38, %v1165_v37  ;;  %v1424_v61 = vsel %vm884_vm3, %v1419_v54, 0 }
 0x555   : > { %v3046_v41 = vpop.eup %3045 }
 0x556   : > { %v1168_v48 = vmul.f32 %v3046_v41, %v3030_v63  ;;  %2815 = vmatmul.mubr.msk.bf16.vlgmr.msra.gmra.mrb[8].mxu0 %vm1082_vm4, %v1172_v40  ;;  %v3048_v50 = vpop.eup %3047  ;;  %v1474_v63 = vsel %vm884_vm3, %v1469_v60, 0 }
 0x557   : > { %2825 = vmatpush3.bf16.msra.mxu0 %v1317_v23  ;;  %2826 = vmatprep.mubr.msk.bf16.mxu0 %vm3144_vm2, %v3143_v5  ;;  %v1169_v53 = vmul.f32 %v3048_v50, %v3483_v0  ;;  %v1519_v0 = vpop.permute.xlu1 %1518 }
 0x558   : > { %v1173_v52 = vpack.c.bf16 %v1168_v48, %v1167_v47  ;;  %2836 = vmatprep.subr.bf16.mxu0 %v3143_v5  ;;  %v1524_v2 = vsel %vm884_vm3, %v1519_v0, 0 }
 0x559   : > { %v3050_v49 = vpop.eup %3049 }
 0x55a   : > { %v1170_v58 = vmul.f32 %v3050_v49, %v3034_v4  ;;  %2821 = vmatmul.mubr.msk.bf16.vlgmr.msra.gmra.mrb[16].mxu1 %vm1082_vm4, %v1173_v52 }
 0x55b   : > { %2831 = vmatpush3.bf16.xpose.msra.mxu1 %v1374_v56  ;;  %2832 = vmatprep.mubr.msk.bf16.mxu1 %vm3144_vm2, %v3143_v5 }
 0x55c   : > { %v1174_v59 = vpack.c.bf16 %v1170_v58, %v1169_v53  ;;  %2842 = vmatprep.subr.bf16.mxu1 %v3143_v5 }
 0x55e   : > { %2827 = vmatmul.mubr.msk.bf16.vlgmr.msra.gmra.mrb[12].mxu0 %vm1082_vm4, %v1174_v59 }
 0x55f   : > { %2838 = vmatprep.mubr.msk.bf16.mxu0 %vm3144_vm2, %v3143_v5 }
 0x560   : > { %2837 = vmatpush3.bf16.xpose.msra.mxu0 %v1424_v61 }
 0x561   : > { %2848 = vmatprep.subr.bf16.mxu0 %v3143_v5 }
 0x562   : > { %2833 = vmatmul.mubr.msk.bf16.vlgmr.msra.gmra.mrb[20].mxu1 %vm884_vm3, %v3360_v10 }
 0x563   : > { %2843 = vmatpush3.bf16.xpose.msra.mxu1 %v1474_v63  ;;  %2844 = vmatprep.mubr.msk.bf16.mxu1 %vm3144_vm2, %v3143_v5 }
 0x564   : > { %2854 = vmatprep.subr.bf16.mxu1 %v3143_v5 }
 0x567   : > { %2839 = vmatmul.mubr.msk.bf16.vlgmr.msra.gmra.mrb[16].mxu0 %vm884_vm3, %v3489_v12 }
 0x568   : > { %2849 = vmatpush3.bf16.xpose.msra.mxu0 %v1524_v2  ;;  %2850 = vmatprep.mubr.msk.bf16.mxu0 %vm3144_vm2, %v3143_v5 }
 0x569   : > { %2860 = vmatprep.subr.bf16.mxu0 %v3143_v5 }
 0x56a   : > { %2845 = vmatmul.mubr.msk.bf16.vlgmr.msra.gmra.mrb[24].mxu1 %vm884_vm3, %v3497_v20 }
 0x56b   : > { %2856 = vmatprep.mubr.msk.bf16.mxu1 %vm3144_vm2, %v3143_v5 }
 0x56f   : > { %2851 = vmatmul.mubr.msk.bf16.vlgmr.msra.gmra.mrb[20].mxu0 %vm884_vm3, %v3493_v19 }
 0x570   : > { %2862 = vmatprep.mubr.msk.bf16.mxu0 %vm3144_vm2, %v3143_v5 }
 0x5d4   : > { %v3547_v3 = vpop.f32.mrb[12].mxu1 }
 0x5d5   : > { %v2810_v4 = vpop.f32.mrb[13].mxu1 }
 0x5d6   : > { %v3549_v6 = vpop.f32.mrb[14].mxu1 }
 0x5d7   : > { %v1851_v8 = vpack.c.bf16 %v3549_v6, %v3547_v3  ;;  %v2811_v11 = vpop.f32.mrb[15].mxu1  ;;  %v1847_v3 = vld [vmem:[%s3794_s21] sm:$0xf]  ;;  %v1848_v6 = vld [vmem:[%s3794_s21 + $0x4] sm:$0xf] }
 0x629   : > { %v3553_v13 = vpop.f32.mrb[8].mxu0 }
 0x62a   : > { %v2816_v14 = vpop.f32.mrb[9].mxu0 }
 0x62b   : > { %v3555_v15 = vpop.f32.mrb[10].mxu0 }
 0x62c   : > { %v1853_v16 = vpack.c.bf16 %v3555_v15, %v3553_v13  ;;  %v2817_v21 = vpop.f32.mrb[11].mxu0 }
 0x62d   : > { %v3559_v23 = vpop.f32.mrb[16].mxu1 }
 0x62e   : > { %v2822_v7 = vpop.f32.mrb[17].mxu1 }
 0x62f   : > { %v3561_v9 = vpop.f32.mrb[18].mxu1 }
 0x630   : > { %v1855_v22 = vpack.c.bf16 %v3561_v9, %v3559_v23  ;;  %v2823_v24 = vpop.f32.mrb[19].mxu1 }
 0x631   : > { %v3565_v25 = vpop.f32.mrb[12].mxu0 }
 0x632   : > { %v2828_v26 = vpop.f32.mrb[13].mxu0 }
 0x633   : > { %v3567_v27 = vpop.f32.mrb[14].mxu0 }
 0x634   : > { %v1857_v28 = vpack.c.bf16 %v3567_v27, %v3565_v25  ;;  %v2829_v29 = vpop.f32.mrb[15].mxu0 }
 0x635   : > { %v1410_v30 = vpop.f32.mrb[20].mxu1 }
 0x636   : > { %v1411_v34 = vadd.f32 %v2699_v32, %v1410_v30  ;;  %v2834_v35 = vpop.f32.mrb[21].mxu1 }
 0x637   : > { %v1413_v18 = vpop.f32.mrb[22].mxu1 }
 0x638   : > { %v1414_v17 = vadd.f32 %v2700_v33, %v1413_v18  ;;  %v2835_v36 = vpop.f32.mrb[23].mxu1  ;;  %v1567_v37 = vsel %vm1082_vm4, %v1411_v34, -inf }
 0x639   : > { %1568 = vmax.xlane.f32.xlu0 %v1567_v37 }
 0x63a   : > { %v1460_v38 = vpop.f32.mrb[16].mxu0  ;;  %v1570_v39 = vsel %vm1082_vm4, %v1414_v17, -inf }
 0x63b   : > { %v1461_v40 = vadd.f32 %v2703_v44, %v1460_v38  ;;  %v2840_v41 = vpop.f32.mrb[17].mxu0  ;;  %1571 = vmax.xlane.f32.xlu1 %v1570_v39 }
 0x63c   : > { %v1463_v47 = vpop.f32.mrb[18].mxu0 }
 0x63d   : > { %v1464_v32 = vadd.f32 %v2704_v46, %v1463_v47  ;;  %v2841_v48 = vpop.f32.mrb[19].mxu0  ;;  %v1510_v50 = vpop.f32.mrb[24].mxu1  ;;  %v1573_v31 = vsel %vm1082_vm4, %v1461_v40, -inf }
 0x63e   : > { %1574 = vmax.xlane.f32.xlu0 %v1573_v31  ;;  %v2846_v33 = vpop.f32.mrb[25].mxu1  ;;  %v1511_v44 = vadd.f32 %v2707_v45, %v1510_v50 }
 0x63f   : > { %v1513_v51 = vpop.f32.mrb[26].mxu1  ;;  %v1576_v53 = vsel %vm1082_vm4, %v1464_v32, -inf }
 0x640   : > { %v1514_v52 = vadd.f32 %v2708_v57, %v1513_v51  ;;  %v2847_v49 = vpop.f32.mrb[27].mxu1  ;;  %v1579_v60 = vsel %vm1082_vm4, %v1511_v44, -inf }
 0x642   : > { %1577 = vmax.xlane.f32.xlu0 %v1576_v53  ;;  %v1560_v56 = vpop.f32.mrb[20].mxu0  ;;  %v1582_v42 = vsel %vm1082_vm4, %v1514_v52, -inf }
 0x643   : > { %v2852_v46 = vpop.f32.mrb[21].mxu0  ;;  %1583 = vmax.xlane.f32.xlu1 %v1582_v42  ;;  %v1561_v54 = vadd.f32 %v2711_v62, %v1560_v56 }
 0x644   : > { %v1563_v58 = vpop.f32.mrb[22].mxu0 }
 0x645   : > { %v1564_v59 = vadd.f32 %v2712_v1, %v1563_v58  ;;  %v2853_v57 = vpop.f32.mrb[23].mxu0  ;;  %v1585_v45 = vsel %vm1082_vm4, %v1561_v54, -inf }
 0x646   : > { %1580 = vmax.xlane.f32.xlu0 %v1579_v60 }
 0x647   : > { %v1588_v43 = vsel %vm1082_vm4, %v1564_v59, -inf }
 0x648   : > { %1589 = vmax.xlane.f32.xlu1 %v1588_v43 }
 0x64a   : > { %1586 = vmax.xlane.f32.xlu0 %v1585_v45 }
 0x6c6   : > { %v1569_v61 = vpop.xlane.xlu0 %1568 }
 0x6c7   : > { %v1591_v63 = vsub.f32 %v1411_v34, %v1569_v61 }
 0x6c8   : > { %v1572_v0 = vpop.xlane.xlu1 %1571 }
 0x6c9   : > { %v1599_v2 = vmul.f32 1.442695, %v1591_v63  ;;  %v1592_v4 = vsub.f32 %v1414_v17, %v1572_v0 }
 0x6cb   : > { %3051 = vpow2.f32 %v1599_v2  ;;  %v1601_v62 = vmul.f32 1.442695, %v1592_v4  ;;  %v1575_v11 = vpop.xlane.xlu0 %1574 }
 0x6cc   : > { %v1593_v55 = vsub.f32 %v1461_v40, %v1575_v11 }
 0x6cd   : > { %3053 = vpow2.f32 %v1601_v62 }
 0x6ce   : > { %v1603_v1 = vmul.f32 1.442695, %v1593_v55 }
 0x6cf   : > { %v1578_v14 = vpop.xlane.xlu0 %1577 }
 0x6d0   : > { %3055 = vpow2.f32 %v1603_v1  ;;  %v1594_v21 = vsub.f32 %v1464_v32, %v1578_v14  ;;  %v1584_v7 = vpop.xlane.xlu1 %1583 }
 0x6d1   : > { %v1596_v24 = vsub.f32 %v1514_v52, %v1584_v7 }
 0x6d2   : > { %v1605_v26 = vmul.f32 1.442695, %v1594_v21 }
 0x6d3   : > { %v1609_v29 = vmul.f32 1.442695, %v1596_v24  ;;  %v1581_v30 = vpop.xlane.xlu0 %1580 }
 0x6d4   : > { %3057 = vpow2.f32 %v1605_v26  ;;  %v1595_v35 = vsub.f32 %v1511_v44, %v1581_v30 }
 0x6d5   : > { %v3052_v34 = vpop.eup %3051  ;;  %3059 = vpow2.f32 %v1609_v29  ;;  %v1590_v44 = vpop.xlane.xlu1 %1589 }
 0x6d6   : > { %v1607_v18 = vmul.f32 1.442695, %v1595_v35  ;;  %v1615_v17 = vsel %vm1082_vm4, %v3052_v34, 0.0  ;;  %v1598_v53 = vsub.f32 %v1564_v59, %v1590_v44 }
 0x6d7   : > { %v3054_v36 = vpop.eup %3053  ;;  %v1587_v37 = vpop.xlane.xlu0 %1586  ;;  %1616 = vadd.xlane.f32.xlu0 %v1615_v17 }
 0x6d8   : > { %3061 = vpow2.f32 %v1607_v18  ;;  %v1597_v38 = vsub.f32 %v1561_v54, %v1587_v37  ;;  %v1618_v39 = vsel %vm1082_vm4, %v3054_v36, 0.0  ;;  %v1613_v56 = vmul.f32 1.442695, %v1598_v53  ;;  %v1849_v37 = vld [vmem:[%s3794_s21 + $0x8] sm:$0xf] }
 0x6d9   : > { %1619 = vadd.xlane.f32.xlu1 %v1618_v39  ;;  %v1850_v39 = vld [vmem:[%s3794_s21 + $0xc] sm:$0xf] }
 0x6da   : > { %v3056_v40 = vpop.eup %3055  ;;  %v1611_v41 = vmul.f32 1.442695, %v1597_v38  ;;  %v1983_v38 = vsel %vm1865_vm5, %v1849_v37, 0 }
 0x6db   : > { %v1621_v47 = vsel %vm1082_vm4, %v3056_v40, 0.0 }
 0x6dc   : > { %3063 = vpow2.f32 %v1611_v41  ;;  %1622 = vadd.xlane.f32.xlu0 %v1621_v47 }
 0x6dd   : > { %3065 = vpow2.f32 %v1613_v56 }
 0x6de   : > { %v3058_v32 = vpop.eup %3057 }
 0x6df   : > { %v1624_v48 = vsel %vm1082_vm4, %v3058_v32, 0.0  ;;  %v3060_v50 = vpop.eup %3059 }
 0x6e0   : > { %1625 = vadd.xlane.f32.xlu1 %v1624_v48  ;;  %v1630_v51 = vsel %vm1082_vm4, %v3060_v50, 0.0 }
 0x6e2   : > { %v3062_v31 = vpop.eup %3061 }
 0x6e3   : > { %v1627_v33 = vsel %vm1082_vm4, %v3062_v31, 0.0 }
 0x6e4   : > { %1628 = vadd.xlane.f32.xlu0 %v1627_v33  ;;  %1631 = vadd.xlane.f32.xlu1 %v1630_v51 }
 0x6e6   : > { %v3601_v52 = vpop.eup %3063 }
 0x6e7   : > { %v1633_v49 = vsel %vm1082_vm4, %v3601_v52, 0.0  ;;  %v3066_v42 = vpop.eup %3065 }
 0x6e8   : > { %1634 = vadd.xlane.f32.xlu0 %v1633_v49  ;;  %v1636_v46 = vsel %vm1082_vm4, %v3066_v42, 0.0 }
 0x6f5   : > { %1706 = vrot.lane.b32.xlu1 %v3489_v12, %s3149_s27 }
 0x6f9   : > { %1753 = vrot.lane.b32.xlu1 %v3497_v20, %s3149_s27 }
 0x6fe   : > { %1659 = vrot.lane.b32.xlu0 %v3360_v10, %s3149_s27 }
 0x71d   : > { %1637 = vadd.xlane.f32.xlu1 %v1636_v46 }
 0x72e   : > { %1800 = vrot.lane.b32.xlu1 %v3493_v19, %s3149_s27 }
 0x764   : > { %v1617_v58 = vpop.xlane.xlu0 %1616 }
 0x766   : > { %v1620_v54 = vpop.xlane.xlu1 %1619 }
 0x767   : > { %3067 = vrcp.f32 %v1620_v54 }
 0x768   : > { %3069 = vrcp.f32 %v1617_v58 }
 0x769   : > { %v1623_v12 = vpop.xlane.xlu0 %1622 }
 0x76a   : > { %3071 = vrcp.f32 %v1623_v12 }
 0x76d   : > { %v1626_v20 = vpop.xlane.xlu1 %1625 }
 0x76e   : > { %3073 = vrcp.f32 %v1626_v20 }
 0x771   : > { %v1629_v10 = vpop.xlane.xlu0 %1628  ;;  %v1632_v57 = vpop.xlane.xlu1 %1631 }
 0x772   : > { %3075 = vrcp.f32 %v1629_v10  ;;  %v3068_v59 = vpop.eup %3067 }
 0x773   : > { %3077 = vrcp.f32 %v1632_v57  ;;  %v3070_v60 = vpop.eup %3069  ;;  %v1648_v63 = vmul.f32 %v3068_v59, %v3054_v36  ;;  %v1925_v36 = vsel %vm1865_vm5, %v1848_v6, 0 }
 0x774   : > { %v3072_v61 = vpop.eup %3071  ;;  %v1647_v0 = vmul.f32 %v3070_v60, %v3052_v34 }
 0x775   : > { %v1635_v43 = vpop.xlane.xlu0 %1634  ;;  %v1707_v45 = vpop.permute.xlu1 %1706  ;;  %v1649_v2 = vmul.f32 %v3072_v61, %v3056_v40  ;;  %v2041_v40 = vsel %vm1865_vm5, %v1850_v39, 0 }
 0x776   : > { %2861 = vmatpush3.bf16.msra.mxu0 %v1707_v45  ;;  %v1655_v11 = vpack.c.bf16 %v1648_v63, %v1647_v0  ;;  %3079 = vrcp.f32 %v1635_v43 }
 0x777   : > { %2872 = vmatprep.subr.bf16.mxu0 %v3143_v5 }
 0x778   : > { %v3074_v19 = vpop.eup %3073 }
 0x779   : > { %v1650_v4 = vmul.f32 %v3074_v19, %v3058_v32  ;;  %v1660_v62 = vpop.permute.xlu0 %1659  ;;  %v1754_v21 = vpop.permute.xlu1 %1753 }
 0x77a   : > { %2855 = vmatpush3.bf16.msra.mxu1 %v1660_v62 }
 0x77b   : > { %v1656_v55 = vpack.c.bf16 %v1650_v4, %v1649_v2  ;;  %2866 = vmatprep.subr.bf16.mxu1 %v3143_v5 }
 0x77c   : > { %v3076_v1 = vpop.eup %3075 }
 0x77d   : > { %v3078_v14 = vpop.eup %3077  ;;  %2857 = vmatmul.mubr.msk.bf16.vlgmr.msra.gmra.mrb[28].mxu1 %vm1082_vm4, %v1655_v11  ;;  %2863 = vmatmul.mubr.msk.bf16.vlgmr.msra.gmra.mrb[24].mxu0 %vm1082_vm4, %v1656_v55  ;;  %v1651_v7 = vmul.f32 %v3076_v1, %v3062_v31 }
 0x77e   : > { %2867 = vmatpush3.bf16.msra.mxu1 %v1754_v21  ;;  %2868 = vmatprep.mubr.msk.bf16.mxu1 %vm3144_vm2, %v3143_v5  ;;  %v1652_v24 = vmul.f32 %v3078_v14, %v3060_v50 }
 0x77f   : > { %2874 = vmatprep.mubr.msk.bf16.mxu0 %vm3144_vm2, %v3143_v5  ;;  %2922 = vmatprep.subr.msk.bf16.mxu1 %vm1865_vm5, %v1847_v3 }
 0x780   : > { %v1657_v26 = vpack.c.bf16 %v1652_v24, %v1651_v7  ;;  %v3080_v35 = vpop.eup %3079 }
 0x781   : > { %v1653_v5 = vmul.f32 %v3080_v35, %v3601_v52 }
 0x785   : > { %2869 = vmatmul.mubr.msk.bf16.vlgmr.msra.gmra.mrb[32].mxu1 %vm1082_vm4, %v1657_v26 }
 0x786   : > { %2880 = vmatprep.mubr.msk.bf16.mxu1 %vm884_vm3, %v1851_v8  ;;  %v1867_v8 = vsel %vm1865_vm5, %v1847_v3, 0 }
 0x787   : > { %2879 = vmatpush3.bf16.msra.mxu1 %v1867_v8 }
 0x788   : > { %2924 = vmatprep.subr.msk.bf16.mxu1 %vm1865_vm5, %v1849_v37 }
 0x7aa   : > { %v1638_v29 = vpop.xlane.xlu1 %1637 }
 0x7ab   : > { %3081 = vrcp.f32 %v1638_v29 }
 0x7ae   : > { %v1801_v30 = vpop.permute.xlu1 %1800 }
 0x7af   : > { %2873 = vmatpush3.bf16.msra.mxu0 %v1801_v30 }
 0x7b0   : > { %2923 = vmatprep.subr.msk.bf16.mxu0 %vm1865_vm5, %v1848_v6 }
 0x7b5   : > { %v3082_v34 = vpop.eup %3081 }
 0x7b6   : > { %v1654_v18 = vmul.f32 %v3082_v34, %v3066_v42 }
 0x7b8   : > { %v1658_v17 = vpack.c.bf16 %v1654_v18, %v1653_v5 }
 0x7ba   : > { %2875 = vmatmul.mubr.msk.bf16.vlgmr.msra.gmra.mrb[28].mxu0 %vm1082_vm4, %v1658_v17 }
 0x7bb   : > { %2886 = vmatprep.mubr.msk.bf16.mxu0 %vm884_vm3, %v1853_v16  ;;  %2885 = vmatpush3.bf16.msra.mxu0 %v1925_v36 }
 0x7bc   : > { %2925 = vmatprep.subr.msk.bf16.mxu0 %vm1865_vm5, %v1850_v39 }
 0x850   : > { %v1699_v41 = vpop.f32.mrb[28].mxu1  ;;  %v1746_v47 = vpop.f32.mrb[24].mxu0 }
 0x851   : > { %v2858_v13 = vpop.f32.mrb[29].mxu1  ;;  %v2864_v15 = vpop.f32.mrb[25].mxu0 }
 0x852   : > { %v1702_v16 = vpop.f32.mrb[30].mxu1  ;;  %v1749_v32 = vpop.f32.mrb[26].mxu0  ;;  %v3100_v13 = vld [vmem:[%s3317_s8] sm:$0xff] }
 0x853   : > { %v1852_v48 = vpack.c.bf16 %v1702_v16, %v1699_v41  ;;  %v1854_v50 = vpack.c.bf16 %v1749_v32, %v1746_v47  ;;  %v2859_v31 = vpop.f32.mrb[31].mxu1  ;;  %v2865_v33 = vpop.f32.mrb[27].mxu0  ;;  %v3099_v41 = vld [vmem:[%s3317_s8 + $0x10] sm:$0xff]  ;;  %v3101_v32 = vld [vmem:[%s3317_s8 + $0x8] sm:$0xff] }
 0x854   : > { %v3102_v31 = vld [vmem:[%s3317_s8 + $0x18] sm:$0xff] }
 0x855   : > { %2881 = vmatmul.mubr.msk.bf16.vlgmr.msra.gmra.mrb[36].mxu1 %vm884_vm3, %v1852_v48  ;;  %2887 = vmatmul.mubr.msk.bf16.vlgmr.msra.gmra.mrb[32].mxu0 %vm884_vm3, %v1854_v50 }
 0x856   : > { %2892 = vmatprep.mubr.msk.bf16.mxu1 %vm884_vm3, %v1855_v22  ;;  %2898 = vmatprep.mubr.msk.bf16.mxu0 %vm884_vm3, %v1857_v28 }
 0x857   : > { %2891 = vmatpush3.bf16.msra.mxu1 %v1983_v38  ;;  %2897 = vmatpush3.bf16.msra.mxu0 %v2041_v40  ;;  %v2675_v40 = vld [vmem:[%s3795_s3] ss:$0 sm:$0xff] }
 0x858   : > { %v1793_v51 = vpop.f32.mrb[32].mxu1 }
 0x859   : > { %v2870_v52 = vpop.f32.mrb[33].mxu1 }
 0x85a   : > { %v1796_v49 = vpop.f32.mrb[34].mxu1 }
 0x85b   : > { %v1856_v44 = vpack.c.bf16 %v1796_v49, %v1793_v51  ;;  %v2871_v53 = vpop.f32.mrb[35].mxu1 }
 0x85d   : > { %2893 = vmatmul.mubr.msk.bf16.vlgmr.msra.gmra.mrb[40].mxu1 %vm884_vm3, %v1856_v44 }
 0x88d   : > { %v1840_v56 = vpop.f32.mrb[28].mxu0 }
 0x88e   : > { %v2876_v42 = vpop.f32.mrb[29].mxu0 }
 0x88f   : > { %v1843_v46 = vpop.f32.mrb[30].mxu0 }
 0x890   : > { %v1858_v23 = vpack.c.bf16 %v1843_v46, %v1840_v56  ;;  %v2877_v9 = vpop.f32.mrb[31].mxu0 }
 0x892   : > { %2899 = vmatmul.mubr.msk.bf16.vlgmr.msra.gmra.mrb[36].mxu0 %vm884_vm3, %v1858_v23 }
 0x928   : > { %v2882_v22 = vpop.f32.mrb[36].mxu1  ;;  %v2888_v25 = vpop.f32.mrb[32].mxu0 }
 0x929   : > { %v2106_v27 = vsel %vm674_vm1, %v2882_v22, 0.0  ;;  %v2107_v28 = vsel %vm674_vm1, %v2888_v25, 0.0  ;;  %v1903_v58 = vpop.f32.mrb[37].mxu1  ;;  %v1961_v54 = vpop.f32.mrb[33].mxu0 }
 0x92a   : > { %v2108_v12 = vadd.f32 %v2107_v28, %v2106_v27  ;;  %v2092_v20 = vsel %vm674_vm1, %v1903_v58, 0.0  ;;  %v2093_v10 = vsel %vm674_vm1, %v1961_v54, 0.0  ;;  %v2883_v57 = vpop.f32.mrb[38].mxu1  ;;  %v2889_v59 = vpop.f32.mrb[34].mxu0 }
 0x92b   : > { %v2094_v60 = vadd.f32 %v2093_v10, %v2092_v20  ;;  %v2113_v43 = vsel %vm674_vm1, %v2883_v57, 0.0  ;;  %v2114_v45 = vsel %vm674_vm1, %v2889_v59, 0.0  ;;  %v1906_v61 = vpop.f32.mrb[39].mxu1  ;;  %v1964_v63 = vpop.f32.mrb[35].mxu0 }
 0x92c   : > { %v2115_v19 = vadd.f32 %v2114_v45, %v2113_v43  ;;  %v2099_v0 = vsel %vm674_vm1, %v1906_v61, 0.0  ;;  %v2100_v2 = vsel %vm674_vm1, %v1964_v63, 0.0 }
 0x92d   : > { %v2101_v4 = vadd.f32 %v2100_v2, %v2099_v0  ;;  %v3005_v0 = vld [vmem:[%s3299_s17] sm:$0xff]   ;;  %v3006_v2 = vld [vmem:[%s3299_s17 + $0x8] sm:$0xff]  }
 0x92e   : > { %2902 = vmatprep.subr.bf16.mxu1 %v3005_v0 }
 0x92f   : > { %2903 = vmatpush3.bf16.msra.mxu1 %v3005_v0 }
 0x930   : > { %v2894_v62 = vpop.f32.mrb[40].mxu1  ;;  %2904 = vmatprep.subr.bf16.mxu1 %v3006_v2 }
 0x931   : > { %v2109_v11 = vsel %vm674_vm1, %v2894_v62, 0.0  ;;  %v2019_v55 = vpop.f32.mrb[41].mxu1 }
 0x932   : > { %v2110_v1 = vadd.f32 %v2109_v11, %v2108_v12  ;;  %v2095_v14 = vsel %vm674_vm1, %v2019_v55, 0.0  ;;  %v2895_v21 = vpop.f32.mrb[42].mxu1 }
 0x933   : > { %v2096_v7 = vadd.f32 %v2095_v14, %v2094_v60  ;;  %v2116_v24 = vsel %vm674_vm1, %v2895_v21, 0.0  ;;  %v2022_v26 = vpop.f32.mrb[43].mxu1  ;;  %2905 = vmatpush3.bf16.msra.mxu1 %v3006_v2 }
 0x934   : > { %v2117_v29 = vadd.f32 %v2116_v24, %v2115_v19  ;;  %v2102_v30 = vsel %vm674_vm1, %v2022_v26, 0.0 }
 0x935   : > { %v2103_v35 = vadd.f32 %v2102_v30, %v2101_v4 }
 0x965   : > { %v2900_v34 = vpop.f32.mrb[36].mxu0 }
 0x966   : > { %v2111_v5 = vsel %vm674_vm1, %v2900_v34, 0.0  ;;  %v2077_v18 = vpop.f32.mrb[37].mxu0  ;;  %v2676_v34 = vld [vmem:[%s3796_s4] ss:$0 sm:$0xff] }
 0x967   : > { %v2112_v17 = vadd.f32 %v2111_v5, %v2110_v1  ;;  %v2097_v3 = vsel %vm674_vm1, %v2077_v18, 0.0  ;;  %v2901_v6 = vpop.f32.mrb[38].mxu0 }
 0x968   : > { %v2098_v8 = vadd.f32 %v2097_v3, %v2096_v7  ;;  %v2118_v36 = vsel %vm674_vm1, %v2901_v6, 0.0  ;;  %v2080_v37 = vpop.f32.mrb[39].mxu0 }
 0x969   : > { %v2119_v38 = vadd.f32 %v2118_v36, %v2117_v29  ;;  %v2104_v39 = vsel %vm674_vm1, %v2080_v37, 0.0  ;;  %v2122_v47 = vadd.f32 %v3099_v41, %v2112_v17 }
 0x96a   : > { %v2120_v15 = vadd.f32 %v3100_v13, %v2098_v8  ;;  %v2105_v16 = vadd.f32 %v2104_v39, %v2103_v35  ;;  %v2677_v8 = vld [vmem:[%s3798_s24] ss:$0 sm:$0xff] }
 0x96b   : > { %v2123_v33 = vadd.f32 %v3102_v31, %v2119_v38  ;;  %v3680_v49 = vadd.f32 %v2675_v40, %v2122_v47  ;;  %v3007_v31 = vld [vmem:[%s3308_s14] sm:$0xff]  }
 0x96c   : > { %v2121_v48 = vadd.f32 %v3101_v32, %v2105_v16  ;;  %v3673_v50 = vadd.f32 %v2675_v40, %v2120_v15  ;;  %2910 = vmatprep.subr.bf16.mxu0 %v3007_v31 }
 0x96d   : > { %v2143_v53 = vsel %vm674_vm1, %v3680_v49, 0.0  ;;  %v3686_v56 = vadd.f32 %v2675_v40, %v2123_v33  ;;  %2911 = vmatpush3.bf16.msra.mxu0 %v3007_v31  ;;  %v3008_v33 = vld [vmem:[%s3308_s14 + $0x8] sm:$0xff]  }
 0x96e   : > { %v2137_v51 = vsel %vm674_vm1, %v3673_v50, 0.0  ;;  %v3678_v52 = vadd.f32 %v2675_v40, %v2121_v48  ;;  %2912 = vmatprep.subr.bf16.mxu0 %v3008_v33 }
 0x96f   : > { %2138 = vadd.xlane.f32.xlu0 %v2137_v51  ;;  %v2146_v42 = vsel %vm674_vm1, %v3686_v56, 0.0  ;;  %v3009_v51 = vld [vmem:[%s3308_s14 + $0x10] sm:$0xff]  }
 0x970   : > { %v2140_v44 = vsel %vm674_vm1, %v3678_v52, 0.0 }
 0x971   : > { %2141 = vadd.xlane.f32.xlu1 %v2140_v44  ;;  %2913 = vmatpush3.bf16.msra.mxu0 %v3008_v33  ;;  %v3010_v44 = vld [vmem:[%s3308_s14 + $0x18] sm:$0xff]  }
 0x972   : > { %2914 = vmatprep.subr.bf16.mxu0 %v3009_v51 }
 0x973   : > { %2144 = vadd.xlane.f32.xlu0 %v2143_v53  ;;  %v2678_v53 = vld [vmem:[%s639_s20] ss:$0 sm:$0xff] }
 0x975   : > { %2915 = vmatpush3.bf16.msra.mxu0 %v3009_v51 }
 0x976   : > { %2916 = vmatprep.subr.bf16.mxu0 %v3010_v44 }
 0x977   : > { %2147 = vadd.xlane.f32.xlu0 %v2146_v42 }
 0x979   : > { %2917 = vmatpush3.bf16.msra.mxu0 %v3010_v44 }
 0x9fc   : > { %v2139_v46 = vpop.xlane.xlu0 %2138 }
 0x9fd   : > { %v2149_v23 = vmul.f32 0.03125, %v2139_v46 }
 0x9fe   : > { %v2142_v9 = vpop.xlane.xlu1 %2141 }
 0x9ff   : > { %v2153_v22 = vsub.f32 %v3673_v50, %v2149_v23  ;;  %v2150_v25 = vmul.f32 0.03125, %v2142_v9 }
 0xa00   : > { %v2145_v27 = vpop.xlane.xlu0 %2144 }
 0xa01   : > { %v2154_v28 = vsub.f32 %v3678_v52, %v2150_v25  ;;  %v2151_v58 = vmul.f32 0.03125, %v2145_v27  ;;  %v2157_v54 = vmul.f32 %v2153_v22, %v2153_v22 }
 0xa03   : > { %v2155_v12 = vsub.f32 %v3680_v49, %v2151_v58  ;;  %v2161_v20 = vsel %vm674_vm1, %v2157_v54, 0.0  ;;  %v2158_v10 = vmul.f32 %v2154_v28, %v2154_v28 }
 0xa04   : > { %2162 = vadd.xlane.f32.xlu0 %v2161_v20  ;;  %v2148_v57 = vpop.xlane.xlu0 %2147 }
 0xa05   : > { %v2152_v59 = vmul.f32 0.03125, %v2148_v57  ;;  %v2164_v60 = vsel %vm674_vm1, %v2158_v10, 0.0  ;;  %v2159_v43 = vmul.f32 %v2155_v12, %v2155_v12 }
 0xa06   : > { %2165 = vadd.xlane.f32.xlu1 %v2164_v60 }
 0xa07   : > { %v2156_v45 = vsub.f32 %v3686_v56, %v2152_v59  ;;  %v2167_v61 = vsel %vm674_vm1, %v2159_v43, 0.0 }
 0xa08   : > { %2168 = vadd.xlane.f32.xlu0 %v2167_v61 }
 0xa09   : > { %v2160_v63 = vmul.f32 %v2156_v45, %v2156_v45 }
 0xa0b   : > { %v2170_v19 = vsel %vm674_vm1, %v2160_v63, 0.0 }
 0xa0c   : > { %2171 = vadd.xlane.f32.xlu1 %v2170_v19 }
 0xa91   : > { %v2163_v4 = vpop.xlane.xlu0 %2162 }
 0xa92   : > { %v2173_v62 = vmul.f32 0.03125, %v2163_v4 }
 0xa93   : > { %v2166_v11 = vpop.xlane.xlu1 %2165 }
 0xa94   : > { %v2177_v55 = vadd.f32 1e-05, %v2173_v62  ;;  %v2174_v1 = vmul.f32 0.03125, %v2166_v11 }
 0xa95   : > { %v2169_v14 = vpop.xlane.xlu0 %2168 }
 0xa96   : > { %3083 = vrsqrt.f32 %v2177_v55  ;;  %v2178_v21 = vadd.f32 1e-05, %v2174_v1  ;;  %v2175_v7 = vmul.f32 0.03125, %v2169_v14 }
 0xa98   : > { %3085 = vrsqrt.f32 %v2178_v21  ;;  %v2179_v24 = vadd.f32 1e-05, %v2175_v7 }
 0xa99   : > { %v2172_v26 = vpop.xlane.xlu1 %2171 }
 0xa9a   : > { %3087 = vrsqrt.f32 %v2179_v24  ;;  %v2176_v29 = vmul.f32 0.03125, %v2172_v26 }
 0xa9c   : > { %v2180_v30 = vadd.f32 1e-05, %v2176_v29 }
 0xa9e   : > { %3089 = vrsqrt.f32 %v2180_v30 }
 0xaa0   : > { %v3084_v35 = vpop.eup %3083 }
 0xaa1   : > { %v2185_v5 = vmul.f32 %v3084_v35, %v2153_v22 }
 0xaa2   : > { %v3086_v18 = vpop.eup %3085 }
 0xaa3   : > { %v2186_v17 = vmul.f32 %v3086_v18, %v2154_v28  ;;  %v2195_v3 = vmul.f32 %v2676_v34, %v2185_v5 }
 0xaa4   : > { %v3088_v6 = vpop.eup %3087 }
 0xaa5   : > { %v2187_v36 = vmul.f32 %v3088_v6, %v2155_v12  ;;  %v2196_v37 = vmul.f32 %v2676_v34, %v2186_v17  ;;  %v2205_v38 = vadd.f32 %v2677_v8, %v2195_v3 }
 0xaa7   : > { %v2206_v39 = vadd.f32 %v2677_v8, %v2196_v37  ;;  %v2197_v41 = vmul.f32 %v2676_v34, %v2187_v36 }
 0xaa8   : > { %v3090_v40 = vpop.eup %3089 }
 0xaa9   : > { %v2188_v47 = vmul.f32 %v3090_v40, %v2156_v45  ;;  %v2213_v13 = vpack.c.bf16 %v2206_v39, %v2205_v38  ;;  %v2207_v16 = vadd.f32 %v2677_v8, %v2197_v41  ;;  %v2689_v40 = vld [vmem:[%s647_s6] ss:$0 sm:$0xff] }
 0xaab   : > { %v2198_v15 = vmul.f32 %v2676_v34, %v2188_v47  ;;  %2906 = vmatprep.mubr.msk.bf16.mxu1 %vm674_vm1, %v2213_v13 }
 0xaad   : > { %v2208_v32 = vadd.f32 %v2677_v8, %v2198_v15 }
 0xaaf   : > { %v2214_v48 = vpack.c.bf16 %v2208_v32, %v2207_v16 }
 0xab1   : > { %2907 = vmatmul.mubr.msk.bf16.vlgmr.msra.gmra.mrb[44].mxu1 %vm674_vm1, %v2214_v48 }
 0xb84   : > { %v2908_v42 = vpop.f32.mrb[44].mxu1 }
 0xb85   : > { %v2283_v46 = vadd.f32 %v2908_v42, %v2678_v53  ;;  %v2274_v23 = vpop.f32.mrb[45].mxu1 }
 0xb86   : > { %v2275_v9 = vadd.f32 %v2678_v53, %v2274_v23  ;;  %v2909_v22 = vpop.f32.mrb[46].mxu1 }
 0xb87   : > { %v2291_v25 = vmul.f32 %v2283_v46, %v2283_v46  ;;  %v2286_v27 = vadd.f32 %v2909_v22, %v2678_v53  ;;  %v2277_v28 = vpop.f32.mrb[47].mxu1 }
 0xb88   : > { %v2289_v58 = vmul.f32 %v2275_v9, %v2275_v9  ;;  %v2278_v54 = vadd.f32 %v2678_v53, %v2277_v28 }
 0xb89   : > { %v2295_v12 = vmul.f32 %v2291_v25, %v2283_v46  ;;  %v2292_v20 = vmul.f32 %v2286_v27, %v2286_v27 }
 0xb8a   : > { %v2293_v10 = vmul.f32 %v2289_v58, %v2275_v9  ;;  %v2290_v57 = vmul.f32 %v2278_v54, %v2278_v54 }
 0xb8b   : > { %v2299_v59 = vmul.f32 0.044715, %v2295_v12  ;;  %v2296_v60 = vmul.f32 %v2292_v20, %v2286_v27 }
 0xb8c   : > { %v2297_v43 = vmul.f32 0.044715, %v2293_v10  ;;  %v2294_v45 = vmul.f32 %v2290_v57, %v2278_v54 }
 0xb8d   : > { %v2303_v61 = vadd.f32 %v2299_v59, %v2283_v46  ;;  %v2300_v63 = vmul.f32 0.044715, %v2296_v60 }
 0xb8e   : > { %v2301_v19 = vadd.f32 %v2297_v43, %v2275_v9  ;;  %v2298_v0 = vmul.f32 0.044715, %v2294_v45 }
 0xb8f   : > { %v2307_v2 = vmul.f32 0.7978846, %v2303_v61  ;;  %v2304_v4 = vadd.f32 %v2300_v63, %v2286_v27 }
 0xb90   : > { %v2305_v62 = vmul.f32 0.7978846, %v2301_v19  ;;  %v2302_v11 = vadd.f32 %v2298_v0, %v2278_v54 }
 0xb91   : > { %3091 = vtanh.f32 %v2307_v2  ;;  %v2308_v55 = vmul.f32 0.7978846, %v2304_v4 }
 0xb92   : > { %3093 = vtanh.f32 %v2305_v62  ;;  %v2306_v1 = vmul.f32 0.7978846, %v2302_v11 }
 0xb93   : > { %3095 = vtanh.f32 %v2308_v55 }
 0xb94   : > { %3097 = vtanh.f32 %v2306_v1 }
 0xb9b   : > { %v3092_v14 = vpop.eup %3091 }
 0xb9c   : > { %v3094_v21 = vpop.eup %3093  ;;  %v2315_v7 = vadd.f32 1.0, %v3092_v14 }
 0xb9d   : > { %v3096_v24 = vpop.eup %3095  ;;  %v2313_v26 = vadd.f32 1.0, %v3094_v21 }
 0xb9e   : > { %v3098_v29 = vpop.eup %3097  ;;  %v2319_v30 = vmul.f32 0.5, %v2315_v7  ;;  %v2316_v35 = vadd.f32 1.0, %v3096_v24 }
 0xb9f   : > { %v2317_v34 = vmul.f32 0.5, %v2313_v26  ;;  %v2314_v5 = vadd.f32 1.0, %v3098_v29 }
 0xba0   : > { %v2320_v18 = vmul.f32 0.5, %v2316_v35  ;;  %v2323_v3 = vmul.f32 %v2319_v30, %v2283_v46 }
 0xba1   : > { %v2318_v17 = vmul.f32 0.5, %v2314_v5  ;;  %v2321_v8 = vmul.f32 %v2317_v34, %v2275_v9 }
 0xba2   : > { %v2324_v6 = vmul.f32 %v2320_v18, %v2286_v27 }
 0xba3   : > { %v2322_v36 = vmul.f32 %v2318_v17, %v2278_v54 }
 0xba4   : > { %v2334_v37 = vpack.c.bf16 %v2324_v6, %v2323_v3 }
 0xba5   : > { %v2333_v38 = vpack.c.bf16 %v2322_v36, %v2321_v8 }
 0xba7   : > { %2918 = vmatprep.mubr.msk.bf16.mxu0 %vm2359_vm6, %v2333_v38 }
 0xba8   : > { %2919 = vmatmul.mubr.msk.bf16.vlgmr.msra.gmra.mrb[40].mxu0 %vm2359_vm6, %v2334_v37 }
 0xc7b   : > { %v2920_v39 = vpop.f32.mrb[40].mxu0 }
 0xc7c   : > { %v2400_v41 = vpop.f32.mrb[41].mxu0  ;;  %v2417_v15 = vadd.f32 %v2920_v39, %v3680_v49 }
 0xc7d   : > { %v2415_v47 = vadd.f32 %v2400_v41, %v3673_v50  ;;  %v2921_v13 = vpop.f32.mrb[42].mxu0 }
 0xc7e   : > { %v2403_v16 = vpop.f32.mrb[43].mxu0  ;;  %v2418_v48 = vadd.f32 %v2921_v13, %v3686_v56  ;;  %v2428_v51 = vadd.f32 %v2689_v40, %v2417_v15 }
 0xc7f   : > { %v2426_v32 = vadd.f32 %v2689_v40, %v2415_v47  ;;  %v2416_v31 = vadd.f32 %v2403_v16, %v3678_v52 }
 0xc80   : > { %v2429_v44 = vadd.f32 %v2689_v40, %v2418_v48  ;;  %2432 = vst.msk [vmem:[%s3317_s8 + $0x10] sm:$0xff] %vm674_vm1, %v2428_v51 }
 0xc81   : > { %2430 = vst.msk [vmem:[%s3317_s8] sm:$0xff] %vm674_vm1, %v2426_v32  ;;  %v2427_v33 = vadd.f32 %v2689_v40, %v2416_v31 }
 0xc82   : > { %2433 = vst.msk [vmem:[%s3317_s8 + $0x18] sm:$0xff] %vm674_vm1, %v2429_v44 }
 0xc83   : > { %2431 = vst.msk [vmem:[%s3317_s8 + $0x8] sm:$0xff] %vm674_vm1, %v2427_v33 }
 0xc84 PF: > { %s3799_s6 = sld [smem:[#allocation5_spill]]  ;;  %s3800_s25 = sld [smem:[#allocation3_spill]] }
 0xc85   : > { %s3801_s26 = sld [smem:[#allocation4_spill]]  ;;  %s3802_s27 = sld [smem:[#allocation6_spill]] }
 0xc86   : > { %s3803_s28 = sld [smem:[#allocation7_spill]] }
 0xc8a   : > { %s23_s29 = sadd.s32 1, %s3799_s6  }
 0xc8b   : > { %p20_p8 = scmp.ge.s32.totalorder %s23_s29, 6  }
 0xc8d   :  { %22 = sbr.rel (!%p20_p8) target bundleno = 7 (0x7), region = 142 }

</bundles_post_ra>
